<compile_context>
chip_gen: v7x
topology: tpu7x:2x2x1
jax: 0.10.0
libtpu: 0.0.40
codegen_flags: <defaults>
</compile_context>

<pallas_src>
import functools

import jax
import jax.numpy as jnp
from jax.experimental import pallas as pl
from jax.experimental.pallas import tpu as pltpu


# ----------------------------------------------------------------------------
# Kernels
# ----------------------------------------------------------------------------
def _lgae_fused_kernel(x_ref, lw1_ref, lb1_ref, lw2_ref, lb2_ref,
                       gw1_ref, gb1_ref, gw2_ref, gb2_ref, o_ref, *, inv_hw):
    # x_ref: (1, C, HW) -- one whole batch element resident in VMEM.
    x = x_ref[0]                                                        # (C, HW)
    lw1, lb1 = lw1_ref[...], lb1_ref[...]
    lw2, lb2 = lw2_ref[...], lb2_ref[...]
    gw1, gb1 = gw1_ref[...], gb1_ref[...]
    gw2, gb2 = gw2_ref[...], gb2_ref[...]

    # ---- global branch: adaptive avg-pool(1) + MLP on the (C, 1) column ----
    pooled = jnp.sum(x, axis=1, keepdims=True) * inv_hw                 # (C, 1)
    gh = jnp.maximum(
        jnp.dot(gw1, pooled, preferred_element_type=jnp.float32) + gb1, 0.0)
    g = jnp.dot(gw2, gh, preferred_element_type=jnp.float32) + gb2      # (C, 1)

    # ---- local branch: 1x1 convs as weight-on-left matmuls over HW ----
    lh = jnp.maximum(
        jnp.dot(lw1, x, preferred_element_type=jnp.float32) + lb1, 0.0)  # (Ci, HW)
    loc = jnp.dot(lw2, lh, preferred_element_type=jnp.float32) + lb2     # (C, HW)

    o_ref[0] = x * jax.nn.sigmoid(loc + g)


def _global_pool_kernel(x_ref, gw1_ref, gb1_ref, gw2_ref, gb2_ref,
                        o_ref, acc_ref, *, inv_hw):
    # Tiled global branch: running sum over HW tiles, MLP on the last tile.
    t = pl.program_id(1)

    @pl.when(t == 0)
    def _():
        acc_ref[...] = jnp.zeros_like(acc_ref)

    acc_ref[...] += jnp.sum(x_ref[0], axis=1, keepdims=True)            # (C, 1)

    @pl.when(t == pl.num_programs(1) - 1)
    def _():
        pooled = acc_ref[...] * inv_hw                                  # (C, 1)
        gh = jnp.maximum(
            jnp.dot(gw1_ref[...], pooled,
                    preferred_element_type=jnp.float32) + gb1_ref[...], 0.0)
        o_ref[0] = (jnp.dot(gw2_ref[...], gh,
                            preferred_element_type=jnp.float32) + gb2_ref[...])


def _local_gate_kernel(x_ref, g_ref, lw1_ref, lb1_ref, lw2_ref, lb2_ref, o_ref):
    # x_ref: (1, C, TILE) pixel tile; g_ref: (1, C, 1) precomputed global logits.
    x = x_ref[0]                                                        # (C, TILE)
    g = g_ref[0]                                                        # (C, 1)
    lb1, lb2 = lb1_ref[...], lb2_ref[...]
    lh = jnp.maximum(
        jnp.dot(lw1_ref[...], x, preferred_element_type=jnp.float32) + lb1, 0.0)
    loc = jnp.dot(lw2_ref[...], lh, preferred_element_type=jnp.float32) + lb2
    o_ref[0] = x * jax.nn.sigmoid(loc + g)


# ----------------------------------------------------------------------------
# VMEM budgeting
# ----------------------------------------------------------------------------
def _vmem_capacity_bytes():
    try:
        cap = int(pltpu.get_tpu_info().vmem_capacity_bytes)
        if cap > 0:
            return cap
    except Exception:
        pass
    return 64 << 20        # conservative fallback (v7x per-TC capacity)


def _vmem_limit_bytes():
    # Leave headroom for compiler scratch; matches what ran clean previously
    # on v6e (48 MiB) and stays <= 3/4 of v7x's 64 MiB.
    return min(48 << 20, (_vmem_capacity_bytes() * 3) // 4)


def _default_max_fused_bytes(weight_bytes):
    # Fused footprint ~= 2*slab (input, double-buffered) + 2*slab (output) + weights.
    budget = _vmem_limit_bytes() - weight_bytes - (2 << 20)
    return max(budget // 4, 1 << 20)


# ----------------------------------------------------------------------------
# Wrapper
# ----------------------------------------------------------------------------
def lgae_forward(x_nchw, params, *, tile_hw=None, max_fused_bytes=None):
    """x_nchw: (N, C, H, W) float32.  Returns (N, C, H, W)."""
    N, C, H, W = x_nchw.shape
    HW = H * W
    x = x_nchw.reshape(N, C, HW)          # free reshape, no transpose

    (lw1, lb1, lw2, lb2, gw1, gb1, gw2, gb2) = params
    Ci = lw1.shape[0]
    inv_hw = 1.0 / HW

    def full(shape):
        return pl.BlockSpec(shape, lambda *idx: (0,) * len(shape))

    weight_specs = [full((Ci, C)), full((Ci, 1)), full((C, Ci)), full((C, 1))]
    weight_bytes = 2 * (Ci * C + Ci + C * Ci + C) * 4

    slab_bytes = C * HW * x.dtype.itemsize
    if max_fused_bytes is None:
        max_fused_bytes = _default_max_fused_bytes(weight_bytes)

    # ---- fused path: one kernel, whole (C, HW) slab per batch element ----
    if slab_bytes <= max_fused_bytes:
        out = pl.pallas_call(
            functools.partial(_lgae_fused_kernel, inv_hw=inv_hw),
            out_shape=jax.ShapeDtypeStruct((N, C, HW), x.dtype),
            grid_spec=pltpu.PrefetchScalarGridSpec(
                num_scalar_prefetch=0,
                grid=(N,),
                in_specs=[pl.BlockSpec((1, C, HW), lambda n: (n, 0, 0))]
                         + weight_specs + weight_specs,
                out_specs=pl.BlockSpec((1, C, HW), lambda n: (n, 0, 0)),
            ),
            compiler_params=pltpu.CompilerParams(
                dimension_semantics=("parallel",),
                vmem_limit_bytes=_vmem_limit_bytes(),
            ),
        )(x, lw1, lb1, lw2, lb2, gw1, gb1, gw2, gb2)
        return out.reshape(N, C, H, W)

    # ---- large-HW fallback: tiled global pool, then tiled local + gate ----
    if tile_hw is None:
        for cand in (2048, 1024, 512, 256, 128):
            if HW % cand == 0:
                tile_hw = cand
                break
        else:
            # Ragged spatial size: use the full extent as a single block
            # (full-dim blocks are exempt from the (8,128) divisibility rule).
            # TODO(synk): pad/mask ragged HW that is also too large for VMEM.
            tile_hw = HW
    assert HW % tile_hw == 0
    T = HW // tile_hw

    gatt = pl.pallas_call(
        functools.partial(_global_pool_kernel, inv_hw=inv_hw),
        out_shape=jax.ShapeDtypeStruct((N, C, 1), jnp.float32),
        grid_spec=pltpu.PrefetchScalarGridSpec(
            num_scalar_prefetch=0,
            grid=(N, T),
            in_specs=[pl.BlockSpec((1, C, tile_hw), lambda n, t: (n, 0, t))]
                     + weight_specs,
            out_specs=pl.BlockSpec((1, C, 1), lambda n, t: (n, 0, 0)),
            scratch_shapes=[pltpu.VMEM((C, 1), jnp.float32)],
        ),
        compiler_params=pltpu.CompilerParams(
            dimension_semantics=("parallel", "arbitrary"),
            vmem_limit_bytes=_vmem_limit_bytes(),
        ),
    )(x, gw1, gb1, gw2, gb2)

    out = pl.pallas_call(
        _local_gate_kernel,
        out_shape=jax.ShapeDtypeStruct((N, C, HW), x.dtype),
        grid_spec=pltpu.PrefetchScalarGridSpec(
            num_scalar_prefetch=0,
            grid=(N, T),
            in_specs=[pl.BlockSpec((1, C, tile_hw), lambda n, t: (n, 0, t)),
                      pl.BlockSpec((1, C, 1), lambda n, t: (n, 0, 0))]
                     + weight_specs,
            out_specs=pl.BlockSpec((1, C, tile_hw), lambda n, t: (n, 0, t)),
        ),
        compiler_params=pltpu.CompilerParams(
            dimension_semantics=("parallel", "parallel"),
            vmem_limit_bytes=_vmem_limit_bytes(),
        ),
    )(x, gatt, lw1, lb1, lw2, lb2)
    return out.reshape(N, C, H, W)


# ----------------------------------------------------------------------------
# Parameter construction (deterministic), BN folded into the 1x1 convs.
# Weights kept in PyTorch (out, in) layout; biases as (out, 1) columns.
# ----------------------------------------------------------------------------
def make_params(key, channels, r, eps=1e-5):
    Ci = channels // r

    def branch(k):
        k1, k2, k3, k4, k5, k6, k7, k8 = jax.random.split(k, 8)
        w1 = jax.random.normal(k1, (Ci, channels), jnp.float32) * 0.05
        b1 = jax.random.normal(k2, (Ci,), jnp.float32) * 0.05
        w2 = jax.random.normal(k3, (channels, Ci), jnp.float32) * 0.05
        b2 = jax.random.normal(k4, (channels,), jnp.float32) * 0.05
        # BN affine params (eval mode: running_mean=0, running_var=1)
        g1 = 1.0 + 0.1 * jax.random.normal(k5, (Ci,), jnp.float32)
        be1 = 0.1 * jax.random.normal(k6, (Ci,), jnp.float32)
        g2 = 1.0 + 0.1 * jax.random.normal(k7, (channels,), jnp.float32)
        be2 = 0.1 * jax.random.normal(k8, (channels,), jnp.float32)
        s1 = g1 / jnp.sqrt(1.0 + eps)
        s2 = g2 / jnp.sqrt(1.0 + eps)
        # fold BN:  y = s * (Wx + b) + beta  ->  W' = s*W,  b' = s*b + beta
        w1f = w1 * s1[:, None]
        b1f = b1 * s1 + be1
        w2f = w2 * s2[:, None]
        b2f = b2 * s2 + be2
        return (w1f, b1f[:, None], w2f, b2f[:, None])

    kl, kg = jax.random.split(key)
    return branch(kl) + branch(kg)


# ----------------------------------------------------------------------------
# Pure-JAX reference for correctness check
# ----------------------------------------------------------------------------
def lgae_reference(x_nchw, params):
    (lw1, lb1, lw2, lb2, gw1, gb1, gw2, gb2) = params
    N, C, H, W = x_nchw.shape
    x = x_nchw.reshape(N, C, H * W)

    def mlp(inp, w1, b1, w2, b2):
        h = jnp.maximum(jnp.einsum("oc,ncs->nos", w1, inp) + b1[None], 0.0)
        return jnp.einsum("co,nos->ncs", w2, h) + b2[None]

    local_ = mlp(x, lw1, lb1, lw2, lb2)                    # (N, C, HW)
    pooled = jnp.mean(x, axis=2, keepdims=True)            # (N, C, 1)
    global_ = mlp(pooled, gw1, gb1, gw2, gb2)              # (N, C, 1)
    w = jax.nn.sigmoid(local_ + global_)
    return (x * w).reshape(N, C, H, W)


if __name__ == "__main__":
    channels, r = 128, 4
    N, H, W = 2, 16, 16

    key = jax.random.PRNGKey(0)
    kx, kp = jax.random.split(key)
    x = jax.random.normal(kx, (N, channels, H, W), jnp.float32)
    params = make_params(kp, channels, r)

    ref = jax.block_until_ready(lgae_reference(x, params))

    # Fused single-kernel path (default for this size).
    out = jax.block_until_ready(lgae_forward(x, params))
    assert out.shape == x.shape
    err = float(jnp.max(jnp.abs(out - ref)))
    assert jnp.allclose(out, ref, atol=1e-4, rtol=1e-4), err

    # Large-HW fallback path (forced) to exercise the tiled kernels too.
    out2 = jax.block_until_ready(
        lgae_forward(x, params, tile_hw=128, max_fused_bytes=0))
    err2 = float(jnp.max(jnp.abs(out2 - ref)))
    assert jnp.allclose(out2, ref, atol=1e-4, rtol=1e-4), err2

    print("KERNEL_OK")
</pallas_src>

<mosaic_0001>
module attributes {stable_mosaic.version = 11 : i64} {
  func.func @_lgae_fused_kernel(%arg0: i32, %arg1: memref<1x128x256xf32, #tpu.memory_space<vmem>>, %arg2: memref<32x128xf32, #tpu.memory_space<vmem>>, %arg3: memref<32x1xf32, #tpu.memory_space<vmem>>, %arg4: memref<128x32xf32, #tpu.memory_space<vmem>>, %arg5: memref<128x1xf32, #tpu.memory_space<vmem>>, %arg6: memref<32x128xf32, #tpu.memory_space<vmem>>, %arg7: memref<32x1xf32, #tpu.memory_space<vmem>>, %arg8: memref<128x32xf32, #tpu.memory_space<vmem>>, %arg9: memref<128x1xf32, #tpu.memory_space<vmem>>, %arg10: memref<1x128x256xf32, #tpu.memory_space<vmem>>) attributes {dimension_semantics = [#tpu.dimension_semantics<parallel>], iteration_bounds = array<i64: 2>, scalar_prefetch = 0 : i64, scratch_operands = 0 : i64, tpu.core_type = #tpu.core_type<tc>, window_params = [{transform_indices = @transform_0, window_bounds = array<i64: 1, 128, 256>}, {pipeline_mode = #tpu.pipeline_mode<synchronous>, transform_indices = @transform_1, window_bounds = array<i64: 32, 128>}, {pipeline_mode = #tpu.pipeline_mode<synchronous>, transform_indices = @transform_2, window_bounds = array<i64: 32, 1>}, {pipeline_mode = #tpu.pipeline_mode<synchronous>, transform_indices = @transform_3, window_bounds = array<i64: 128, 32>}, {pipeline_mode = #tpu.pipeline_mode<synchronous>, transform_indices = @transform_4, window_bounds = array<i64: 128, 1>}, {pipeline_mode = #tpu.pipeline_mode<synchronous>, transform_indices = @transform_5, window_bounds = array<i64: 32, 128>}, {pipeline_mode = #tpu.pipeline_mode<synchronous>, transform_indices = @transform_6, window_bounds = array<i64: 32, 1>}, {pipeline_mode = #tpu.pipeline_mode<synchronous>, transform_indices = @transform_7, window_bounds = array<i64: 128, 32>}, {pipeline_mode = #tpu.pipeline_mode<synchronous>, transform_indices = @transform_8, window_bounds = array<i64: 128, 1>}, {transform_indices = @transform_9, window_bounds = array<i64: 1, 128, 256>}]} {
    %c0 = arith.constant 0 : index
    %c0_0 = arith.constant 0 : index
    %c0_1 = arith.constant 0 : index
    %0 = vector.load %arg1[%c0, %c0_0, %c0_1] : memref<1x128x256xf32, #tpu.memory_space<vmem>>, vector<1x128x256xf32>
    %1 = vector.shape_cast %0 : vector<1x128x256xf32> to vector<128x256xf32>
    %c0_2 = arith.constant 0 : index
    %c0_3 = arith.constant 0 : index
    %2 = vector.load %arg2[%c0_2, %c0_3] : memref<32x128xf32, #tpu.memory_space<vmem>>, vector<32x128xf32>
    %c0_4 = arith.constant 0 : index
    %c0_5 = arith.constant 0 : index
    %3 = vector.load %arg3[%c0_4, %c0_5] : memref<32x1xf32, #tpu.memory_space<vmem>>, vector<32x1xf32>
    %c0_6 = arith.constant 0 : index
    %c0_7 = arith.constant 0 : index
    %4 = vector.load %arg4[%c0_6, %c0_7] : memref<128x32xf32, #tpu.memory_space<vmem>>, vector<128x32xf32>
    %c0_8 = arith.constant 0 : index
    %c0_9 = arith.constant 0 : index
    %5 = vector.load %arg5[%c0_8, %c0_9] : memref<128x1xf32, #tpu.memory_space<vmem>>, vector<128x1xf32>
    %c0_10 = arith.constant 0 : index
    %c0_11 = arith.constant 0 : index
    %6 = vector.load %arg6[%c0_10, %c0_11] : memref<32x128xf32, #tpu.memory_space<vmem>>, vector<32x128xf32>
    %c0_12 = arith.constant 0 : index
    %c0_13 = arith.constant 0 : index
    %7 = vector.load %arg7[%c0_12, %c0_13] : memref<32x1xf32, #tpu.memory_space<vmem>>, vector<32x1xf32>
    %c0_14 = arith.constant 0 : index
    %c0_15 = arith.constant 0 : index
    %8 = vector.load %arg8[%c0_14, %c0_15] : memref<128x32xf32, #tpu.memory_space<vmem>>, vector<128x32xf32>
    %c0_16 = arith.constant 0 : index
    %c0_17 = arith.constant 0 : index
    %9 = vector.load %arg9[%c0_16, %c0_17] : memref<128x1xf32, #tpu.memory_space<vmem>>, vector<128x1xf32>
    %cst = arith.constant dense<0.000000e+00> : vector<128xf32>
    %10 = vector.multi_reduction <add>, %1, %cst [1] : vector<128x256xf32> to vector<128xf32>
    %11 = vector.shape_cast %10 : vector<128xf32> to vector<128x1xf32>
    %cst_18 = arith.constant 3.906250e-03 : f32
    %12 = vector.broadcast %cst_18 : f32 to vector<128x1xf32>
    %13 = arith.mulf %11, %12 : vector<128x1xf32>
    %cst_19 = arith.constant dense<0.000000e+00> : vector<32x1xf32>
    %14 = tpu.matmul %6, %13, %cst_19 {dimension_numbers = #tpu.dot_dimension_numbers<[1], [0], [0], [1], [0, 0, 1, 1], [], []>} : vector<32x128xf32>, vector<128x1xf32>, vector<32x1xf32> -> vector<32x1xf32>
    %15 = arith.addf %14, %7 : vector<32x1xf32>
    %cst_20 = arith.constant 0.000000e+00 : f32
    %16 = vector.broadcast %cst_20 : f32 to vector<32x1xf32>
    %17 = arith.maximumf %15, %16 : vector<32x1xf32>
    %cst_21 = arith.constant dense<0.000000e+00> : vector<128x1xf32>
    %18 = tpu.matmul %8, %17, %cst_21 {dimension_numbers = #tpu.dot_dimension_numbers<[1], [0], [0], [1], [0, 0, 1, 1], [], []>} : vector<128x32xf32>, vector<32x1xf32>, vector<128x1xf32> -> vector<128x1xf32>
    %19 = arith.addf %18, %9 : vector<128x1xf32>
    %cst_22 = arith.constant dense<0.000000e+00> : vector<32x256xf32>
    %20 = tpu.matmul %2, %1, %cst_22 {dimension_numbers = #tpu.dot_dimension_numbers<[1], [0], [0], [1], [0, 0, 1, 1], [], []>} : vector<32x128xf32>, vector<128x256xf32>, vector<32x256xf32> -> vector<32x256xf32>
    %21 = vector.broadcast %3 : vector<32x1xf32> to vector<32x256xf32>
    %22 = arith.addf %20, %21 : vector<32x256xf32>
    %cst_23 = arith.constant 0.000000e+00 : f32
    %23 = vector.broadcast %cst_23 : f32 to vector<32x256xf32>
    %24 = arith.maximumf %22, %23 : vector<32x256xf32>
    %cst_24 = arith.constant dense<0.000000e+00> : vector<128x256xf32>
    %25 = tpu.matmul %4, %24, %cst_24 {dimension_numbers = #tpu.dot_dimension_numbers<[1], [0], [0], [1], [0, 0, 1, 1], [], []>} : vector<128x32xf32>, vector<32x256xf32>, vector<128x256xf32> -> vector<128x256xf32>
    %26 = vector.broadcast %5 : vector<128x1xf32> to vector<128x256xf32>
    %27 = arith.addf %25, %26 : vector<128x256xf32>
    %28 = vector.broadcast %19 : vector<128x1xf32> to vector<128x256xf32>
    %29 = arith.addf %27, %28 : vector<128x256xf32>
    %30 = arith.negf %29 : vector<128x256xf32>
    %31 = math.exp %30 : vector<128x256xf32>
    %cst_25 = arith.constant 1.000000e+00 : f32
    %32 = vector.broadcast %cst_25 : f32 to vector<128x256xf32>
    %33 = arith.addf %32, %31 : vector<128x256xf32>
    %34 = arith.divf %32, %33 : vector<128x256xf32>
    %35 = arith.mulf %1, %34 : vector<128x256xf32>
    %c0_26 = arith.constant 0 : index
    %c0_27 = arith.constant 0 : index
    %c0_28 = arith.constant 0 : index
    %36 = vector.load %arg10[%c0_26, %c0_27, %c0_28] : memref<1x128x256xf32, #tpu.memory_space<vmem>>, vector<1x128x256xf32>
    %37 = vector.shape_cast %36 : vector<1x128x256xf32> to vector<128x256xf32>
    %38 = vector.shape_cast %35 : vector<128x256xf32> to vector<1x128x256xf32>
    tpu.vector_store %arg10[%c0_26, %c0_27, %c0_28], %38 {strides = array<i32>} : memref<1x128x256xf32, #tpu.memory_space<vmem>>, vector<1x128x256xf32>,
    return
  }
  func.func @transform_0(%arg0: i32) -> (i32, i32, i32) {
    %c0_i32 = arith.constant 0 : i32
    %c0_i32_0 = arith.constant 0 : i32
    %c0_i32_1 = arith.constant 0 : i32
    return %arg0, %c0_i32, %c0_i32_0 : i32, i32, i32
  }
  func.func @transform_1(%arg0: i32) -> (i32, i32) {
    %c0_i32 = arith.constant 0 : i32
    %c0_i32_0 = arith.constant 0 : i32
    %c0_i32_1 = arith.constant 0 : i32
    return %c0_i32, %c0_i32_0 : i32, i32
  }
  func.func @transform_2(%arg0: i32) -> (i32, i32) {
    %c0_i32 = arith.constant 0 : i32
    %c0_i32_0 = arith.constant 0 : i32
    %c0_i32_1 = arith.constant 0 : i32
    return %c0_i32, %c0_i32_0 : i32, i32
  }
  func.func @transform_3(%arg0: i32) -> (i32, i32) {
    %c0_i32 = arith.constant 0 : i32
    %c0_i32_0 = arith.constant 0 : i32
    %c0_i32_1 = arith.constant 0 : i32
    return %c0_i32, %c0_i32_0 : i32, i32
  }
  func.func @transform_4(%arg0: i32) -> (i32, i32) {
    %c0_i32 = arith.constant 0 : i32
    %c0_i32_0 = arith.constant 0 : i32
    %c0_i32_1 = arith.constant 0 : i32
    return %c0_i32, %c0_i32_0 : i32, i32
  }
  func.func @transform_5(%arg0: i32) -> (i32, i32) {
    %c0_i32 = arith.constant 0 : i32
    %c0_i32_0 = arith.constant 0 : i32
    %c0_i32_1 = arith.constant 0 : i32
    return %c0_i32, %c0_i32_0 : i32, i32
  }
  func.func @transform_6(%arg0: i32) -> (i32, i32) {
    %c0_i32 = arith.constant 0 : i32
    %c0_i32_0 = arith.constant 0 : i32
    %c0_i32_1 = arith.constant 0 : i32
    return %c0_i32, %c0_i32_0 : i32, i32
  }
  func.func @transform_7(%arg0: i32) -> (i32, i32) {
    %c0_i32 = arith.constant 0 : i32
    %c0_i32_0 = arith.constant 0 : i32
    %c0_i32_1 = arith.constant 0 : i32
    return %c0_i32, %c0_i32_0 : i32, i32
  }
  func.func @transform_8(%arg0: i32) -> (i32, i32) {
    %c0_i32 = arith.constant 0 : i32
    %c0_i32_0 = arith.constant 0 : i32
    %c0_i32_1 = arith.constant 0 : i32
    return %c0_i32, %c0_i32_0 : i32, i32
  }
  func.func @transform_9(%arg0: i32) -> (i32, i32, i32) {
    %c0_i32 = arith.constant 0 : i32
    %c0_i32_0 = arith.constant 0 : i32
    %c0_i32_1 = arith.constant 0 : i32
    return %arg0, %c0_i32, %c0_i32_0 : i32, i32, i32
  }
}

</mosaic_0001>

<bundles_post_ra>
// kernel: tpu_custom_call.1
= control target key start
LH: loop header
LB: loop body
LE: loop exit
PB: predicated region body
PF: predicated region fallthrough
CT: control target
= control target key end

     0   :  { %14 = vsyncpa [#allocation3], 0  ;;  %s2964_s0 = inlined_call_operand.vmem [shape: f32[2,128,256], index: 0, kind: input, shape index: {}]   ;;  %s2965_s1 = inlined_call_operand.vmem [shape: f32[32,128], index: 1, kind: input, shape index: {}]   ;;  %s2966_s2 = inlined_call_operand.vmem [shape: f32[32,1], index: 2, kind: input, shape index: {}]   ;;  %s2967_s3 = inlined_call_operand.vmem [shape: f32[128,32], index: 3, kind: input, shape index: {}]   ;;  %s2968_s4 = inlined_call_operand.vmem [shape: f32[128,1], index: 4, kind: input, shape index: {}]   ;;  %s2969_s5 = inlined_call_operand.vmem [shape: f32[32,128], index: 5, kind: input, shape index: {}]   ;;  %s2970_s6 = inlined_call_operand.vmem [shape: f32[32,1], index: 6, kind: input, shape index: {}]   ;;  %s2971_s7 = inlined_call_operand.vmem [shape: f32[128,32], index: 7, kind: input, shape index: {}]   ;;  %s2972_s8 = inlined_call_operand.vmem [shape: f32[128,1], index: 8, kind: input, shape index: {}]   ;;  %s2973_s9 = inlined_call_operand.hbm [shape: f32[2,128,256], index: 9, kind: output, shape index: {}]  }
   0x1   :  { %16 = vsyncpa [#allocation3 + $0x1], 0  ;;  %s2236_s30 = smov 0   ;;  %s2238_s10 = smov 0  }
   0x2   :  { %s2240_s11 = smov 0   ;;  %s2242_s12 = smov 0  }
   0x3 LB: > { %s2257_s13 = sadd.s32 4294967295, %s2179_s12   ;;  %s1640_s14 = sadd.s32 4294967294, %s2179_s12   ;;  %s2179_s12 = sphi %s2242_s12, %s2979_s12   ;;  %s2175_s11 = sphi %s2240_s11, %s2978_s11   ;;  %s2171_s10 = sphi %s2238_s10, %s2977_s10   ;;  %s2167_s30 = sphi %s2236_s30, %s2976_s30  }
   0x4   : > { %s2261_s15 = sadd.s32 1, %s2179_s12   ;;  %s223_s16 = sadd.s32 1, %s2175_s11 }
   0x5   : > { %s220_s17 = ssub.s32 %s2179_s12, %s2261_s15  ;;  %p233_p0 = scmp.ne.s32.totalorder %s2175_s11, %s2171_s10 }
   0x6   : > { %p221_p1 = scmp.eq.s32.totalorder %s220_s17, 0  ;;  %p234_p2 = scmp.eq.s32.totalorder %s2257_s13, 1 }
   0x7   : > { %p239_p3 = scmp.ne.s32.totalorder %s2171_s10, %s2167_s30  ;;  %p240_p4 = scmp.eq.s32.totalorder %s1640_s14, 1 }
   0x8   : > { %s2272_s18 = scalar_select %p221_p1, %s2175_s11, %s223_s16  }
   0x9   : > { %p2274_p5 = por %p234_p2, %p233_p0  ;;  %p2278_p6 = por %p240_p4, %p239_p3 }
   0xa   : > { %p1643_p7 = scmp.ge.s32.totalorder %s2179_s12, 1  ;;  %p290_p8 = scmp.lt.s32.totalorder %s2179_s12, 3 }
   0xc   : > { %p291_p9 = pnand %p1643_p7, %p290_p8 }
   0xd   : > { %p326_p10 = scmp.lt.s32.totalorder (!%p291_p9), %s2257_s13, 1  ;;  %v403_v48 = vld [vmem:[%s2969_s5] sm:$0xff] (!%p291_p9)  ;;  %vm596_vm0 = vcmask (!%p291_p9), 261120   ;;  %s323_s17 = sand.u32 (!%p291_p9), 1, %s2171_s10  }
   0xe   : > { %294 = sbr.rel (%p291_p9) target bundleno = 1021 (0x3fd), region = 56  ;;  %1790 = vmatprep.mubr.f32.mxu0 (!%p291_p9), %v403_v48  ;;  %s1717_s23 = sshll.u32 (!%p291_p9), %s2257_s13, 12 }
   0xf   : > { %s2913_s27 = scalar_lea.hbm (!%p291_p9), %s2973_s9, %s1717_s23  ;;  %s2923_s28 = scalar_lea.sflag (!%p291_p9), [#allocation3], %s323_s17 }
  0x10   : > { %s2183_s14 = smov (!%p291_p9), [#allocation2]  }
  0x11   : > { %s2121_s16 = sshll.u32 (!%p291_p9), %s2183_s14, 4  ;;  %s2122_s16 = int_to_ptr.vmem [resolvable:$false] %s2121_s16 }
  0x15   : > { %s327_s21 = scalar_select %p326_p10, %s2257_s13, 1 }
  0x17   : > { %s1716_s22 = sshll.u32 %s327_s21, 8  ;;  %s2800_s21 = sshll.u32 %s323_s17, 8 }
  0x18   : > { %s2289_s25 = scalar_lea.vmem %s2964_s0, %s1716_s22  ;;  %s2819_s22 = scalar_lea.vmem [#allocation2], %s2800_s21 }
  0x19   : > { %v2292_v0 = vld [vmem:[%s2289_s25 + $0x20] sm:$0xff]  ;;  %v2295_v1 = vld [vmem:[%s2289_s25 + $0x28] sm:$0xff]  ;;  %v2306_v5 = vld [vmem:[%s2289_s25 + $0x30] sm:$0xff]  ;;  %s1578_s24 = sshll.u32 %s2819_s22, 4  ;;  %s2123_s21 = scalar_lea.vmem %s2122_s16, 8192  ;;  %s2915_s24 = int_to_ptr.vmem [resolvable:$true] %s1578_s24 }
  0x1a   : > { %v2298_v2 = vld [vmem:[%s2289_s25] sm:$0xff]  ;;  %v449_v3 = vadd.f32 %v2295_v1, %v2292_v0  ;;  %v2303_v4 = vld [vmem:[%s2289_s25 + $0x8] sm:$0xff]  ;;  %v2309_v6 = vld [vmem:[%s2289_s25 + $0x38] sm:$0xff]  ;;  %s2117_s29 = scalar_lea.vmem %s2915_s24, 4096  ;;  %p2124_p0 = scmp.lt.s32.totalorder %s2915_s24, %s2122_s16 }
  0x1b   : > { %v443_v7 = vadd.f32 %v2303_v4, %v2298_v2  ;;  %v2314_v8 = vld [vmem:[%s2289_s25 + $0x10] sm:$0xff]  ;;  %v2317_v9 = vld [vmem:[%s2289_s25 + $0x18] sm:$0xff]  ;;  %v452_v10 = vadd.f32 %v2309_v6, %v2306_v5  ;;  %v2330_v14 = vld [vmem:[%s2289_s25 + $0x40] sm:$0xff]  ;;  %p2118_p11 = scmp.ne.s32.totalorder %s2915_s24, %s2117_s29  ;;  %p2125_p1 = scmp.lt.s32.totalorder %s2123_s21, %s2117_s29 }
  0x1c   : > { %450 = vadd.xlane.f32.xlu1 %v449_v3  ;;  %v446_v11 = vadd.f32 %v2317_v9, %v2314_v8  ;;  %v2324_v12 = vld [vmem:[%s2289_s25 + $0x50] sm:$0xff]  ;;  %v2327_v13 = vld [vmem:[%s2289_s25 + $0x58] sm:$0xff]  ;;  %v2333_v15 = vld [vmem:[%s2289_s25 + $0x48] sm:$0xff] }
  0x1d   : > { %444 = vadd.xlane.f32.xlu0 %v443_v7  ;;  %v458_v16 = vadd.f32 %v2327_v13, %v2324_v12  ;;  %v455_v17 = vadd.f32 %v2333_v15, %v2330_v14  ;;  %v2340_v18 = vld [vmem:[%s2289_s25 + $0x70] sm:$0xff]  ;;  %v2343_v19 = vld [vmem:[%s2289_s25 + $0x78] sm:$0xff]  ;;  %v2346_v20 = vld [vmem:[%s2289_s25 + $0x60] sm:$0xff]  ;;  %p2119_p12 = pnand %p2118_p11, %p2274_p5  ;;  %p2126_p2 = por %p2125_p1, %p2124_p0 }
  0x1e   : > { %v2349_v21 = vld [vmem:[%s2289_s25 + $0x68] sm:$0xff]  ;;  %v464_v22 = vadd.f32 %v2343_v19, %v2340_v18  ;;  %v2356_v24 = vld [vmem:[%s2289_s25 + $0x90] sm:$0xff]  ;;  %v2359_v25 = vld [vmem:[%s2289_s25 + $0x98] sm:$0xff] }
  0x1f   : > { %v461_v23 = vadd.f32 %v2349_v21, %v2346_v20  ;;  %v2362_v26 = vld [vmem:[%s2289_s25 + $0x80] sm:$0xff]  ;;  %v2365_v27 = vld [vmem:[%s2289_s25 + $0x88] sm:$0xff]  ;;  %v470_v28 = vadd.f32 %v2359_v25, %v2356_v24  ;;  %v2372_v30 = vld [vmem:[%s2289_s25 + $0xb0] sm:$0xff]  ;;  %p2120_p13 = pneg %p2119_p12 }
  0x20   : > { %453 = vadd.xlane.f32.xlu1 %v452_v10  ;;  %v467_v29 = vadd.f32 %v2365_v27, %v2362_v26  ;;  %v2375_v31 = vld [vmem:[%s2289_s25 + $0xb8] sm:$0xff]  ;;  %v2378_v32 = vld [vmem:[%s2289_s25 + $0xa0] sm:$0xff]  ;;  %v2381_v33 = vld [vmem:[%s2289_s25 + $0xa8] sm:$0xff] }
  0x21   : > { %447 = vadd.xlane.f32.xlu0 %v446_v11  ;;  %v476_v34 = vadd.f32 %v2375_v31, %v2372_v30  ;;  %v473_v35 = vadd.f32 %v2381_v33, %v2378_v32  ;;  %v2388_v36 = vld [vmem:[%s2289_s25 + $0xd0] sm:$0xff]  ;;  %v2391_v37 = vld [vmem:[%s2289_s25 + $0xd8] sm:$0xff]  ;;  %v2394_v38 = vld [vmem:[%s2289_s25 + $0xc0] sm:$0xff]  ;;  %p2127_p3 = pnand %p2126_p2, %p2120_p13 }
  0x22   : > { %v2397_v39 = vld [vmem:[%s2289_s25 + $0xc8] sm:$0xff]  ;;  %v482_v40 = vadd.f32 %v2391_v37, %v2388_v36  ;;  %v2404_v42 = vld [vmem:[%s2289_s25 + $0xf0] sm:$0xff]  ;;  %v2407_v43 = vld [vmem:[%s2289_s25 + $0xf8] sm:$0xff] }
  0x23   : > { %v479_v41 = vadd.f32 %v2397_v39, %v2394_v38  ;;  %v2410_v44 = vld [vmem:[%s2289_s25 + $0xe0] sm:$0xff]  ;;  %v2413_v45 = vld [vmem:[%s2289_s25 + $0xe8] sm:$0xff]  ;;  %v488_v46 = vadd.f32 %v2407_v43, %v2404_v42 }
  0x24   : > { %459 = vadd.xlane.f32.xlu1 %v458_v16  ;;  %v485_v47 = vadd.f32 %v2413_v45, %v2410_v44 }
  0x25   : > { %456 = vadd.xlane.f32.xlu0 %v455_v17 }
  0x28   : > { %465 = vadd.xlane.f32.xlu1 %v464_v22 }
  0x29   : > { %462 = vadd.xlane.f32.xlu0 %v461_v23 }
  0x2c   : > { %471 = vadd.xlane.f32.xlu1 %v470_v28 }
  0x2d   : > { %468 = vadd.xlane.f32.xlu0 %v467_v29 }
  0x30   : > { %477 = vadd.xlane.f32.xlu1 %v476_v34 }
  0x31   : > { %474 = vadd.xlane.f32.xlu0 %v473_v35 }
  0x34   : > { %483 = vadd.xlane.f32.xlu1 %v482_v40 }
  0x35   : > { %480 = vadd.xlane.f32.xlu0 %v479_v41 }
  0x38   : > { %489 = vadd.xlane.f32.xlu1 %v488_v46 }
  0x39   : > { %486 = vadd.xlane.f32.xlu0 %v485_v47 }
  0xa9   : > { %v451_v49 = vpop.xlane.xlu1 %450 }
  0xaa   : > { %v445_v50 = vpop.xlane.xlu0 %444  ;;  %v493_v53 = vmul.f32 0.00390625, %v451_v49 }
  0xab   : > { %v491_v54 = vmul.f32 0.00390625, %v445_v50 }
  0xad   : > { %v454_v51 = vpop.xlane.xlu1 %453 }
  0xae   : > { %v448_v52 = vpop.xlane.xlu0 %447  ;;  %v494_v55 = vmul.f32 0.00390625, %v454_v51 }
  0xaf   : > { %v492_v56 = vmul.f32 0.00390625, %v448_v52 }
  0xb0   : > { %v1832_v61 = vpack.c.bf16 %v494_v55, %v493_v53 }
  0xb1   : > { %v1828_v57 = vpack.c.bf16 %v492_v56, %v491_v54  ;;  %v460_v58 = vpop.xlane.xlu1 %459 }
  0xb2   : > { %v496_v59 = vmul.f32 0.00390625, %v460_v58  ;;  %v457_v60 = vpop.xlane.xlu0 %456  ;;  %v405_v58 = vld [vmem:[%s2969_s5 + $0x10] sm:$0xff] }
  0xb3   : > { %1829 = vmatprep.subr.bf16.mxu0 %v1828_v57  ;;  %v495_v62 = vmul.f32 0.00390625, %v457_v60  ;;  %v411_v60 = vld [vmem:[%s2971_s7] sm:$0xff] }
  0xb4   : > { %1831 = vmatpush3.bf16.msra.mxu0 %v1828_v57  ;;  %v404_v57 = vld [vmem:[%s2969_s5 + $0x8] sm:$0xff]  ;;  %1804 = vmatprep.mubr.msk.f32.mxu1 %vm596_vm0, %v411_v60 }
  0xb5   : > { %1833 = vmatprep.subr.bf16.mxu0 %v1832_v61  ;;  %v1836_v63 = vpack.c.bf16 %v496_v59, %v495_v62  ;;  %v466_v3 = vpop.xlane.xlu1 %465  ;;  %v406_v59 = vld [vmem:[%s2969_s5 + $0x18] sm:$0xff]  ;;  %v368_v62 = vld [vmem:[%s2966_s2 + $0x8] sm:$0xff] }
  0xb6   : > { %v498_v7 = vmul.f32 0.00390625, %v466_v3  ;;  %v463_v10 = vpop.xlane.xlu0 %462  ;;  %v367_v3 = vld [vmem:[%s2966_s2] sm:$0xff] }
  0xb7   : > { %v497_v11 = vmul.f32 0.00390625, %v463_v10  ;;  %v392_v10 = vld [vmem:[%s2968_s4 + $0x28] sm:$0xff] }
  0xb8   : > { %1835 = vmatpush3.bf16.msra.mxu0 %v1832_v61  ;;  %v2181_v61 = vmov 0.0  }
  0xb9   : > { %v1840_v16 = vpack.c.bf16 %v498_v7, %v497_v11  ;;  %1837 = vmatprep.subr.bf16.mxu0 %v1836_v63  ;;  %v472_v17 = vpop.xlane.xlu1 %471  ;;  %v369_v7 = vld [vmem:[%s2966_s2 + $0x10] sm:$0xff]  ;;  %v370_v11 = vld [vmem:[%s2966_s2 + $0x18] sm:$0xff] }
  0xba   : > { %v500_v22 = vmul.f32 0.00390625, %v472_v17  ;;  %v469_v23 = vpop.xlane.xlu0 %468  ;;  %v387_v17 = vld [vmem:[%s2968_s4] sm:$0xff] }
  0xbb   : > { %v499_v28 = vmul.f32 0.00390625, %v469_v23  ;;  %v388_v23 = vld [vmem:[%s2968_s4 + $0x8] sm:$0xff] }
  0xbc   : > { %1839 = vmatpush3.bf16.msra.mxu0 %v1836_v63  ;;  %v2182_v63 = vmov 0  }
  0xbd   : > { %v1844_v29 = vpack.c.bf16 %v500_v22, %v499_v28  ;;  %1841 = vmatprep.subr.bf16.mxu0 %v1840_v16  ;;  %v478_v34 = vpop.xlane.xlu1 %477  ;;  %1956 = vset.pattern.permute.xlu1 %v2182_v63  ;;  %v396_v22 = vld [vmem:[%s2968_s4 + $0x48] sm:$0xff]  ;;  %v398_v28 = vld [vmem:[%s2968_s4 + $0x58] sm:$0xff] }
  0xbe   : > { %v502_v35 = vmul.f32 0.00390625, %v478_v34  ;;  %v475_v40 = vpop.xlane.xlu0 %474  ;;  %1955 = vset.pattern.permute.xlu0 %v2182_v63  ;;  %797 = vperm.xlu1 %1956, %v368_v62   ;;  %v400_v34 = vld [vmem:[%s2968_s4 + $0x68] sm:$0xff] }
  0xbf   : > { %v501_v41 = vmul.f32 0.00390625, %v475_v40  ;;  %792 = vperm.xlu0 %1955, %v367_v3   ;;  %v402_v40 = vld [vmem:[%s2968_s4 + $0x78] sm:$0xff] }
  0xc0   : > { %1843 = vmatpush3.bf16.msra.mxu0 %v1840_v16  ;;  %v394_v16 = vld [vmem:[%s2968_s4 + $0x38] sm:$0xff] }
  0xc1   : > { %v1848_v46 = vpack.c.bf16 %v502_v35, %v501_v41  ;;  %1845 = vmatprep.subr.bf16.mxu0 %v1844_v29  ;;  %v484_v47 = vpop.xlane.xlu1 %483  ;;  %v390_v35 = vld [vmem:[%s2968_s4 + $0x18] sm:$0xff]  ;;  %v391_v41 = vld [vmem:[%s2968_s4 + $0x20] sm:$0xff] }
  0xc2   : > { %v504_v48 = vmul.f32 0.00390625, %v484_v47  ;;  %v481_v49 = vpop.xlane.xlu0 %480  ;;  %802 = vperm.xlu1 %1956, %v369_v7   ;;  %v395_v47 = vld [vmem:[%s2968_s4 + $0x40] sm:$0xff] }
  0xc3   : > { %v503_v50 = vmul.f32 0.00390625, %v481_v49  ;;  %934 = vperm.xlu0 %1955, %v392_v10   ;;  %v399_v49 = vld [vmem:[%s2968_s4 + $0x60] sm:$0xff] }
  0xc4   : > { %1847 = vmatpush3.bf16.msra.mxu0 %v1844_v29  ;;  %v389_v29 = vld [vmem:[%s2968_s4 + $0x10] sm:$0xff] }
  0xc5   : > { %v1852_v51 = vpack.c.bf16 %v504_v48, %v503_v50  ;;  %1849 = vmatprep.subr.bf16.mxu0 %v1848_v46  ;;  %v490_v52 = vpop.xlane.xlu1 %489  ;;  %v397_v48 = vld [vmem:[%s2968_s4 + $0x50] sm:$0xff] }
  0xc6   : > { %v506_v53 = vmul.f32 0.00390625, %v490_v52  ;;  %v487_v54 = vpop.xlane.xlu0 %486  ;;  %807 = vperm.xlu1 %1956, %v370_v11   ;;  %v401_v50 = vld [vmem:[%s2968_s4 + $0x70] sm:$0xff]  ;;  %v407_v52 = vld [vmem:[%s2970_s6] sm:$0xff] }
  0xc7   : > { %v505_v55 = vmul.f32 0.00390625, %v487_v54  ;;  %944 = vperm.xlu0 %1955, %v394_v16  }
  0xc8   : > { %1851 = vmatpush3.bf16.msra.mxu0 %v1848_v46  ;;  %v393_v46 = vld [vmem:[%s2968_s4 + $0x30] sm:$0xff] }
  0xc9   : > { %v1856_v56 = vpack.c.bf16 %v506_v53, %v505_v55  ;;  %1853 = vmatprep.subr.bf16.mxu0 %v1852_v51 }
  0xca   : > { %909 = vperm.xlu1 %1956, %v387_v17  }
  0xcb   : > { %954 = vperm.xlu0 %1955, %v396_v22   ;;  %v1868_v22 = vpack.c.bf16 %v2317_v9, %v2303_v4  ;;  %v1874_v4 = vpack.c.bf16 %v2306_v5, %v2292_v0  ;;  %v1878_v0 = vpack.c.bf16 %v2324_v12, %v2330_v14  ;;  %v416_v5 = vld [vmem:[%s2971_s7 + $0x28] sm:$0xff]  ;;  %v1880_v9 = vpack.c.bf16 %v2343_v19, %v2349_v21  ;;  %v419_v14 = vld [vmem:[%s2971_s7 + $0x40] sm:$0xff] }
  0xcc   : > { %1855 = vmatpush3.bf16.msra.mxu0 %v1852_v51  ;;  %v408_v51 = vld [vmem:[%s2970_s6 + $0x8] sm:$0xff]  ;;  %v1882_v12 = vpack.c.bf16 %v2340_v18, %v2346_v20  ;;  %v1886_v18 = vpack.c.bf16 %v2356_v24, %v2362_v26  ;;  %v421_v20 = vld [vmem:[%s2971_s7 + $0x50] sm:$0xff]  ;;  %v1888_v21 = vpack.c.bf16 %v2375_v31, %v2381_v33  ;;  %v1890_v24 = vpack.c.bf16 %v2372_v30, %v2378_v32  ;;  %v423_v26 = vld [vmem:[%s2971_s7 + $0x60] sm:$0xff] }
  0xcd   : > { %1857 = vmatprep.subr.bf16.mxu0 %v1856_v56  ;;  %v420_v19 = vld [vmem:[%s2971_s7 + $0x48] sm:$0xff]  ;;  %v1894_v30 = vpack.c.bf16 %v2388_v36, %v2394_v38  ;;  %v425_v32 = vld [vmem:[%s2971_s7 + $0x70] sm:$0xff]  ;;  %v1896_v33 = vpack.c.bf16 %v2407_v43, %v2413_v45  ;;  %v1898_v36 = vpack.c.bf16 %v2404_v42, %v2410_v44  ;;  %v363_v38 = vld [vmem:[%s2965_s1] sm:$0xff] }
  0xce   : > { %914 = vperm.xlu1 %1956, %v388_v23   ;;  %v1870_v23 = vpack.c.bf16 %v2314_v8, %v2298_v2  ;;  %v414_v2 = vld [vmem:[%s2971_s7 + $0x18] sm:$0xff]  ;;  %v415_v8 = vld [vmem:[%s2971_s7 + $0x20] sm:$0xff]  ;;  %v424_v31 = vld [vmem:[%s2971_s7 + $0x68] sm:$0xff] }
  0xcf   : > { %964 = vperm.xlu0 %1955, %v398_v28   ;;  %v412_v28 = vld [vmem:[%s2971_s7 + $0x8] sm:$0xff]  ;;  %v365_v42 = vld [vmem:[%s2965_s1 + $0x10] sm:$0xff]  ;;  %v366_v43 = vld [vmem:[%s2965_s1 + $0x18] sm:$0xff] }
  0xd0   : > { %1859 = vmatpush3.bf16.msra.mxu0 %v1856_v56  ;;  %v428_v44 = vld [vmem:[%s2972_s8 + $0x8] sm:$0xff]  ;;  %v427_v45 = vld [vmem:[%s2972_s8] sm:$0xff] }
  0xd2   : > { %919 = vperm.xlu1 %1956, %v389_v29   ;;  %v413_v29 = vld [vmem:[%s2971_s7 + $0x10] sm:$0xff] }
  0xd3   : > { %1791 = vmatmul.mubr.f32.vlgmr.msra.gmra.mrb[0].mxu0 %v404_v57  ;;  %974 = vperm.xlu0 %1955, %v400_v34   ;;  %v410_v57 = vld [vmem:[%s2970_s6 + $0x18] sm:$0xff]  ;;  %v1872_v34 = vpack.c.bf16 %v2309_v6, %v2295_v1  ;;  %v1876_v1 = vpack.c.bf16 %v2327_v13, %v2333_v15  ;;  %v417_v6 = vld [vmem:[%s2971_s7 + $0x30] sm:$0xff]  ;;  %v1884_v15 = vpack.c.bf16 %v2359_v25, %v2365_v27 }
  0xd4   : > { %1793 = vmatprep.mubr.f32.mxu0 %v405_v58  ;;  %v418_v13 = vld [vmem:[%s2971_s7 + $0x38] sm:$0xff]  ;;  %v1892_v27 = vpack.c.bf16 %v2391_v37, %v2397_v39  ;;  %v364_v39 = vld [vmem:[%s2965_s1 + $0x8] sm:$0xff] }
  0xd5   : > { %v422_v25 = vld [vmem:[%s2971_s7 + $0x58] sm:$0xff] }
  0xd6   : > { %924 = vperm.xlu1 %1956, %v390_v35   ;;  %v426_v37 = vld [vmem:[%s2971_s7 + $0x78] sm:$0xff] }
  0xd7   : > { %1794 = vmatmul.mubr.f32.gmra.mrb[2].mxu0 %v406_v59  ;;  %984 = vperm.xlu0 %1955, %v402_v40   ;;  %v409_v59 = vld [vmem:[%s2970_s6 + $0x10] sm:$0xff] }
  0xd8   : > { %1099 = vmatprep.mubr.f32.mxu0 %v2181_v61 }
  0xda   : > { %929 = vperm.xlu1 %1956, %v391_v41  }
  0xde   : > { %939 = vperm.xlu1 %1956, %v393_v46  }
  0xe2   : > { %949 = vperm.xlu1 %1956, %v395_v47   ;;  %v430_v47 = vld [vmem:[%s2972_s8 + $0x18] sm:$0xff] }
  0xe6   : > { %959 = vperm.xlu1 %1956, %v397_v48   ;;  %v429_v48 = vld [vmem:[%s2972_s8 + $0x10] sm:$0xff] }
  0xea   : > { %969 = vperm.xlu1 %1956, %v399_v49  }
  0xee   : > { %979 = vperm.xlu1 %1956, %v401_v50  }
 0x1a6   : > { %v1792_v53 = vpop.f32.mrb[0].mxu0 }
 0x1a7   : > { %v579_v54 = vadd.f32 %v1792_v53, %v408_v51  ;;  %v573_v55 = vpop.f32.mrb[1].mxu0  ;;  %v432_v53 = vld [vmem:[%s2972_s8 + $0x28] sm:$0xff] }
 0x1a8   : > { %v574_v56 = vadd.f32 %v573_v55, %v407_v52 }
 0x1a9   : > { %v593_v58 = vmax.f32 %v579_v54, 0.0  ;;  %v431_v54 = vld [vmem:[%s2972_s8 + $0x20] sm:$0xff] }
 0x1aa   : > { %v592_v60 = vmax.f32 %v574_v56, 0.0  ;;  %v1795_v62 = vpop.f32.mrb[2].mxu0 }
 0x1ab   : > { %v589_v63 = vadd.f32 %v1795_v62, %v410_v57  ;;  %v583_v3 = vpop.f32.mrb[3].mxu0 }
 0x1ac   : > { %v584_v7 = vadd.f32 %v583_v3, %v409_v59  ;;  %v1860_v10 = vpack.c.bf16 %v593_v58, %v592_v60  ;;  %v434_v59 = vld [vmem:[%s2972_s8 + $0x38] sm:$0xff]  ;;  %v433_v60 = vld [vmem:[%s2972_s8 + $0x30] sm:$0xff] }
 0x1ad   : > { %v595_v11 = vmax.f32 %v589_v63, 0.0 }
 0x1ae   : > { %v594_v16 = vmax.f32 %v584_v7, 0.0  ;;  %1861 = vmatprep.subr.bf16.mxu1 %v1860_v10 }
 0x1af   : > { %1863 = vmatpush3.bf16.msra.mxu1 %v1860_v10  ;;  %v436_v10 = vld [vmem:[%s2972_s8 + $0x48] sm:$0xff] }
 0x1b0   : > { %v1864_v17 = vpack.c.bf16 %v595_v11, %v594_v16  ;;  %v435_v11 = vld [vmem:[%s2972_s8 + $0x40] sm:$0xff] }
 0x1b2   : > { %1865 = vmatprep.subr.bf16.mxu1 %v1864_v17 }
 0x1b3   : > { %1867 = vmatpush3.bf16.msra.mxu1 %v1864_v17 }
 0x1b4   : > { %1869 = vmatprep.subr.bf16.mxu1 %v1868_v22 }
 0x1b6   : > { %1805 = vmatmul.mubr.msk.f32.vlgmr.msra.gmra.mrb[0].mxu1 %vm596_vm0, %v412_v28  ;;  %v438_v28 = vld [vmem:[%s2972_s8 + $0x58] sm:$0xff] }
 0x1b7   : > { %1871 = vmatpush1.bf16.msra.mxu1 %v1870_v23  ;;  %1807 = vmatprep.mubr.msk.f32.mxu1 %vm596_vm0, %v413_v29  ;;  %v437_v29 = vld [vmem:[%s2972_s8 + $0x50] sm:$0xff] }
 0x1b8   : > { %1873 = vmatprep.subr.bf16.mxu1 %v1872_v34 }
 0x1ba   : > { %1808 = vmatmul.mubr.msk.f32.gmra.mrb[2].mxu1 %vm596_vm0, %v414_v2 }
 0x1bb   : > { %1875 = vmatpush1.bf16.msra.mxu1 %v1874_v4  ;;  %1810 = vmatprep.mubr.msk.f32.mxu1 %vm596_vm0, %v415_v8 }
 0x1bc   : > { %1877 = vmatprep.subr.bf16.mxu1 %v1876_v1  ;;  %v440_v1 = vld [vmem:[%s2972_s8 + $0x68] sm:$0xff] }
 0x1be   : > { %1811 = vmatmul.mubr.msk.f32.gmra.mrb[4].mxu1 %vm596_vm0, %v416_v5 }
 0x1bf   : > { %1879 = vmatpush1.bf16.msra.mxu1 %v1878_v0  ;;  %1813 = vmatprep.mubr.msk.f32.mxu1 %vm596_vm0, %v417_v6  ;;  %v439_v0 = vld [vmem:[%s2972_s8 + $0x60] sm:$0xff] }
 0x1c0   : > { %1881 = vmatprep.subr.bf16.mxu1 %v1880_v9 }
 0x1c2   : > { %1814 = vmatmul.mubr.msk.f32.gmra.mrb[6].mxu1 %vm596_vm0, %v418_v13  ;;  %v442_v13 = vld [vmem:[%s2972_s8 + $0x78] sm:$0xff] }
 0x1c3   : > { %1883 = vmatpush1.bf16.msra.mxu1 %v1882_v12  ;;  %1816 = vmatprep.mubr.msk.f32.mxu1 %vm596_vm0, %v419_v14  ;;  %v441_v14 = vld [vmem:[%s2972_s8 + $0x70] sm:$0xff] }
 0x1c4   : > { %1885 = vmatprep.subr.bf16.mxu1 %v1884_v15 }
 0x1c6   : > { %1817 = vmatmul.mubr.msk.f32.gmra.mrb[8].mxu1 %vm596_vm0, %v420_v19 }
 0x1c7   : > { %1887 = vmatpush1.bf16.msra.mxu1 %v1886_v18  ;;  %1819 = vmatprep.mubr.msk.f32.mxu1 %vm596_vm0, %v421_v20 }
 0x1c8   : > { %1889 = vmatprep.subr.bf16.mxu1 %v1888_v21  ;;  %v798_v21 = vpop.permute.xlu1 %797 }
 0x1ca   : > { %1820 = vmatmul.mubr.msk.f32.gmra.mrb[10].mxu1 %vm596_vm0, %v422_v25 }
 0x1cb   : > { %1891 = vmatpush1.bf16.msra.mxu1 %v1890_v24  ;;  %1822 = vmatprep.mubr.msk.f32.mxu1 %vm596_vm0, %v423_v26  ;;  %v793_v26 = vpop.permute.xlu0 %792 }
 0x1cc   : > { %1893 = vmatprep.subr.bf16.mxu1 %v1892_v27 }
 0x1ce   : > { %1823 = vmatmul.mubr.msk.f32.gmra.mrb[12].mxu1 %vm596_vm0, %v424_v31 }
 0x1cf   : > { %1895 = vmatpush1.bf16.msra.mxu1 %v1894_v30  ;;  %1825 = vmatprep.mubr.msk.f32.mxu1 %vm596_vm0, %v425_v32 }
 0x1d0   : > { %1897 = vmatprep.subr.bf16.mxu1 %v1896_v33 }
 0x1d2   : > { %1826 = vmatmul.mubr.msk.f32.gmra.mrb[14].mxu1 %vm596_vm0, %v426_v37 }
 0x1d3   : > { %1899 = vmatpush1.bf16.msra.mxu1 %v1898_v36  ;;  %874 = vmatprep.mubr.f32.mxu1 %v2181_v61  ;;  %v803_v36 = vpop.permute.xlu1 %802 }
 0x1d6   : > { %875 = vmatmul.mubr.f32.vlgmr.msra.gmra.mrb[16].mxu1 %v363_v38 }
 0x1d7   : > { %880 = vmatprep.mubr.f32.mxu1 %v2181_v61 }
 0x1da   : > { %881 = vmatmul.mubr.f32.gmra.mrb[18].mxu1 %v364_v39 }
 0x1db   : > { %886 = vmatprep.mubr.f32.mxu1 %v2181_v61 }
 0x1de   : > { %887 = vmatmul.mubr.f32.gmra.mrb[20].mxu1 %v365_v42 }
 0x1df   : > { %892 = vmatprep.mubr.f32.mxu1 %v2181_v61 }
 0x1e2   : > { %893 = vmatmul.mubr.f32.gmra.mrb[22].mxu1 %v366_v43 }
 0x1e3   : > { %1159 = vmatprep.mubr.f32.mxu1 %v2181_v61 }
 0x289   : > { %v1806_v35 = vpop.f32.mrb[0].mxu1 }
 0x28a   : > { %v717_v40 = vadd.f32 %v1806_v35, %v428_v44  ;;  %v711_v41 = vpop.f32.mrb[1].mxu1 }
 0x28b   : > { %v712_v46 = vadd.f32 %v711_v41, %v427_v45 }
 0x28c   : > { %1203 = vperm.xlu0 %1955, %v717_v40  }
 0x28d   : > { %v1809_v49 = vpop.f32.mrb[2].mxu1  ;;  %1198 = vperm.xlu1 %1956, %v712_v46   ;;  %v808_v46 = vpop.permute.xlu1 %807 }
 0x28e   : > { %v727_v50 = vadd.f32 %v1809_v49, %v430_v47  ;;  %v721_v51 = vpop.f32.mrb[3].mxu1 }
 0x28f   : > { %v722_v52 = vadd.f32 %v721_v51, %v429_v48 }
 0x290   : > { %1213 = vperm.xlu0 %1955, %v727_v50  }
 0x291   : > { %v1812_v55 = vpop.f32.mrb[4].mxu1  ;;  %1208 = vperm.xlu1 %1956, %v722_v52  }
 0x292   : > { %v737_v56 = vadd.f32 %v1812_v55, %v432_v53  ;;  %v731_v57 = vpop.f32.mrb[5].mxu1 }
 0x293   : > { %v732_v58 = vadd.f32 %v731_v57, %v431_v54 }
 0x294   : > { %1223 = vperm.xlu0 %1955, %v737_v56  }
 0x295   : > { %v1815_v62 = vpop.f32.mrb[6].mxu1  ;;  %1218 = vperm.xlu1 %1956, %v732_v58   ;;  %v371_v58 = vld [vmem:[%s2967_s3] sm:$0xff] }
 0x296   : > { %v747_v63 = vadd.f32 %v1815_v62, %v434_v59  ;;  %v741_v3 = vpop.f32.mrb[7].mxu1  ;;  %v381_v59 = vld [vmem:[%s2967_s3 + $0x50] sm:$0xff]  ;;  %v382_v62 = vld [vmem:[%s2967_s3 + $0x58] sm:$0xff] }
 0x297   : > { %v742_v7 = vadd.f32 %v741_v3, %v433_v60  ;;  %v372_v60 = vld [vmem:[%s2967_s3 + $0x8] sm:$0xff]  ;;  %v383_v3 = vld [vmem:[%s2967_s3 + $0x60] sm:$0xff] }
 0x298   : > { %1233 = vperm.xlu0 %1955, %v747_v63   ;;  %v373_v63 = vld [vmem:[%s2967_s3 + $0x10] sm:$0xff] }
 0x299   : > { %v1818_v16 = vpop.f32.mrb[8].mxu1  ;;  %1228 = vperm.xlu1 %1956, %v742_v7   ;;  %v374_v7 = vld [vmem:[%s2967_s3 + $0x18] sm:$0xff] }
 0x29a   : > { %v757_v17 = vadd.f32 %v1818_v16, %v436_v10  ;;  %v751_v22 = vpop.f32.mrb[9].mxu1  ;;  %v384_v10 = vld [vmem:[%s2967_s3 + $0x68] sm:$0xff]  ;;  %v385_v16 = vld [vmem:[%s2967_s3 + $0x70] sm:$0xff] }
 0x29b   : > { %v752_v23 = vadd.f32 %v751_v22, %v435_v11  ;;  %v375_v11 = vld [vmem:[%s2967_s3 + $0x20] sm:$0xff]  ;;  %v386_v22 = vld [vmem:[%s2967_s3 + $0x78] sm:$0xff] }
 0x29c   : > { %1243 = vperm.xlu0 %1955, %v757_v17   ;;  %v376_v17 = vld [vmem:[%s2967_s3 + $0x28] sm:$0xff] }
 0x29d   : > { %v1821_v34 = vpop.f32.mrb[10].mxu1  ;;  %1238 = vperm.xlu1 %1956, %v752_v23   ;;  %v377_v23 = vld [vmem:[%s2967_s3 + $0x30] sm:$0xff] }
 0x29e   : > { %v767_v4 = vadd.f32 %v1821_v34, %v438_v28  ;;  %v761_v2 = vpop.f32.mrb[11].mxu1  ;;  %v378_v28 = vld [vmem:[%s2967_s3 + $0x38] sm:$0xff]  ;;  %v380_v34 = vld [vmem:[%s2967_s3 + $0x48] sm:$0xff] }
 0x29f   : > { %v762_v8 = vadd.f32 %v761_v2, %v437_v29  ;;  %v379_v29 = vld [vmem:[%s2967_s3 + $0x40] sm:$0xff] }
 0x2a0   : > { %1253 = vperm.xlu0 %1955, %v767_v4   ;;  %v910_v4 = vpop.permute.xlu1 %909 }
 0x2a1   : > { %v1824_v5 = vpop.f32.mrb[12].mxu1  ;;  %1248 = vperm.xlu1 %1956, %v762_v8  }
 0x2a2   : > { %v777_v6 = vadd.f32 %v1824_v5, %v440_v1  ;;  %v771_v9 = vpop.f32.mrb[13].mxu1  ;;  %v2749_v5 = vpop.permute.xlu0 %934 }
 0x2a3   : > { %v772_v12 = vadd.f32 %v771_v9, %v439_v0 }
 0x2a4   : > { %1263 = vperm.xlu0 %1955, %v777_v6   ;;  %v915_v2 = vpop.permute.xlu1 %914 }
 0x2a5   : > { %v1827_v15 = vpop.f32.mrb[14].mxu1  ;;  %1258 = vperm.xlu1 %1956, %v772_v12  }
 0x2a6   : > { %v787_v18 = vadd.f32 %v1827_v15, %v442_v13  ;;  %v781_v19 = vpop.f32.mrb[15].mxu1  ;;  %v2753_v9 = vpop.permute.xlu0 %944 }
 0x2a7   : > { %v782_v20 = vadd.f32 %v781_v19, %v441_v14 }
 0x2a8   : > { %1273 = vperm.xlu0 %1955, %v787_v18   ;;  %v2743_v8 = vpop.permute.xlu1 %919 }
 0x2a9   : > { %v876_v24 = vpop.f32.mrb[16].mxu1  ;;  %1268 = vperm.xlu1 %1956, %v782_v20  }
 0x2aa   : > { %v878_v25 = vpop.f32.mrb[17].mxu1  ;;  %v877_v27 = vadd.f32 %v876_v24, %v793_v26  ;;  %v2757_v12 = vpop.permute.xlu0 %954 }
 0x2ab   : > { %v879_v30 = vadd.f32 %v878_v25, %v793_v26 }
 0x2ac   : > { %v899_v38 = vmax.f32 %v877_v27, 0.0  ;;  %v2745_v1 = vpop.permute.xlu1 %924 }
 0x2ad   : > { %v882_v31 = vpop.f32.mrb[18].mxu1  ;;  %v900_v42 = vmax.f32 %v879_v30, 0.0 }
 0x2ae   : > { %v883_v32 = vadd.f32 %v882_v31, %v798_v21  ;;  %v884_v33 = vpop.f32.mrb[19].mxu1  ;;  %v965_v14 = vpop.permute.xlu0 %964 }
 0x2af   : > { %v885_v37 = vadd.f32 %v884_v33, %v798_v21 }
 0x2b0   : > { %v901_v39 = vmax.f32 %v883_v32, 0.0  ;;  %v2747_v0 = vpop.permute.xlu1 %929 }
 0x2b1   : > { %v902_v43 = vmax.f32 %v885_v37, 0.0  ;;  %v888_v44 = vpop.f32.mrb[20].mxu1 }
 0x2b2   : > { %v1902_v45 = vpack.c.bf16 %v901_v39, %v899_v38  ;;  %v890_v35 = vpop.f32.mrb[21].mxu1  ;;  %v889_v41 = vadd.f32 %v888_v44, %v803_v36  ;;  %v2759_v18 = vpop.permute.xlu0 %974 }
 0x2b3   : > { %v1900_v40 = vpack.c.bf16 %v902_v43, %v900_v42  ;;  %v891_v47 = vadd.f32 %v890_v35, %v803_v36 }
 0x2b4   : > { %v903_v52 = vmax.f32 %v889_v41, 0.0  ;;  %v2751_v6 = vpop.permute.xlu1 %939 }
 0x2b5   : > { %v894_v48 = vpop.f32.mrb[22].mxu1  ;;  %1901 = vmatprep.subr.bf16.mxu0 %v1900_v40  ;;  %1908 = vmatprep.subr.bf16.mxu1 %v1900_v40  ;;  %v904_v54 = vmax.f32 %v891_v47, 0.0 }
 0x2b6   : > { %v895_v49 = vadd.f32 %v894_v48, %v808_v46  ;;  %v896_v50 = vpop.f32.mrb[23].mxu1  ;;  %1903 = vmatpush1.bf16.msra.mxu0 %v1902_v45  ;;  %1910 = vmatpush1.bf16.msra.mxu1 %v1902_v45  ;;  %v2763_v20 = vpop.permute.xlu0 %984 }
 0x2b7   : > { %v897_v51 = vadd.f32 %v896_v50, %v808_v46 }
 0x2b8   : > { %v905_v53 = vmax.f32 %v895_v49, 0.0 }
 0x2b9   : > { %v906_v55 = vmax.f32 %v897_v51, 0.0 }
 0x2ba   : > { %v1906_v56 = vpack.c.bf16 %v905_v53, %v903_v52 }
 0x2bb   : > { %v1904_v57 = vpack.c.bf16 %v906_v55, %v904_v54 }
 0x2bd   : > { %1905 = vmatprep.subr.bf16.mxu0 %v1904_v57  ;;  %1909 = vmatprep.subr.bf16.mxu1 %v1904_v57 }
 0x2be   : > { %1907 = vmatpush1.bf16.msra.mxu0 %v1906_v56  ;;  %1911 = vmatpush1.bf16.msra.mxu1 %v1906_v56 }
 0x2c1   : > { %1663 = vmatmul.mubr.msk.f32.vlgmr.msra.gmra.mrb[4].mxu0 %vm596_vm0, %v371_v58  ;;  %1673 = vmatmul.mubr.msk.f32.vlgmr.msra.gmra.mrb[24].mxu1 %vm596_vm0, %v381_v59 }
 0x2c2   : > { %1105 = vmatprep.mubr.f32.mxu0 %v2181_v61  ;;  %1165 = vmatprep.mubr.f32.mxu1 %v2181_v61 }
 0x2c5   : > { %1664 = vmatmul.mubr.msk.f32.gmra.mrb[6].mxu0 %vm596_vm0, %v372_v60  ;;  %1674 = vmatmul.mubr.msk.f32.gmra.mrb[26].mxu1 %vm596_vm0, %v382_v62 }
 0x2c6   : > { %1111 = vmatprep.mubr.f32.mxu0 %v2181_v61  ;;  %1171 = vmatprep.mubr.f32.mxu1 %v2181_v61 }
 0x2c9   : > { %1665 = vmatmul.mubr.msk.f32.gmra.mrb[8].mxu0 %vm596_vm0, %v373_v63  ;;  %1675 = vmatmul.mubr.msk.f32.gmra.mrb[28].mxu1 %vm596_vm0, %v383_v3 }
 0x2ca   : > { %1117 = vmatprep.mubr.f32.mxu0 %v2181_v61  ;;  %1177 = vmatprep.mubr.f32.mxu1 %v2181_v61 }
 0x2cd   : > { %1666 = vmatmul.mubr.msk.f32.gmra.mrb[10].mxu0 %vm596_vm0, %v374_v7  ;;  %1676 = vmatmul.mubr.msk.f32.gmra.mrb[30].mxu1 %vm596_vm0, %v384_v10 }
 0x2ce   : > { %1123 = vmatprep.mubr.f32.mxu0 %v2181_v61  ;;  %1183 = vmatprep.mubr.f32.mxu1 %v2181_v61 }
 0x2d1   : > { %1667 = vmatmul.mubr.msk.f32.gmra.mrb[12].mxu0 %vm596_vm0, %v375_v11  ;;  %1677 = vmatmul.mubr.msk.f32.gmra.mrb[32].mxu1 %vm596_vm0, %v385_v16 }
 0x2d2   : > { %1129 = vmatprep.mubr.f32.mxu0 %v2181_v61  ;;  %1189 = vmatprep.mubr.f32.mxu1 %v2181_v61 }
 0x2d5   : > { %1668 = vmatmul.mubr.msk.f32.gmra.mrb[14].mxu0 %vm596_vm0, %v376_v17  ;;  %1678 = vmatmul.mubr.msk.f32.gmra.mrb[34].mxu1 %vm596_vm0, %v386_v22 }
 0x2d6   : > { %1135 = vmatprep.mubr.f32.mxu0 %v2181_v61 }
 0x2d9   : > { %1669 = vmatmul.mubr.msk.f32.gmra.mrb[16].mxu0 %vm596_vm0, %v377_v23 }
 0x2da   : > { %1141 = vmatprep.mubr.f32.mxu0 %v2181_v61 }
 0x2dd   : > { %1670 = vmatmul.mubr.msk.f32.gmra.mrb[18].mxu0 %vm596_vm0, %v378_v28 }
 0x2de   : > { %1147 = vmatprep.mubr.f32.mxu0 %v2181_v61 }
 0x2e1   : > { %1671 = vmatmul.mubr.msk.f32.gmra.mrb[20].mxu0 %vm596_vm0, %v379_v29 }
 0x2e2   : > { %1153 = vmatprep.mubr.f32.mxu0 %v2181_v61  ;;  %v2755_v61 = vpop.permute.xlu1 %949 }
 0x2e5   : > { %1672 = vmatmul.mubr.msk.f32.gmra.mrb[22].mxu0 %vm596_vm0, %v380_v34 }
 0x2e6   : > { %v960_v13 = vpop.permute.xlu1 %959 }
 0x2ea   : > { %v970_v15 = vpop.permute.xlu1 %969 }
 0x2ee   : > { %v2761_v19 = vpop.permute.xlu1 %979 }
 0x30b   : > { %v1204_v24 = vpop.permute.xlu0 %1203 }
 0x30c   : > { %v1199_v21 = vpop.permute.xlu1 %1198 }
 0x30f   : > { %v2767_v26 = vpop.permute.xlu0 %1213 }
 0x310   : > { %v2765_v25 = vpop.permute.xlu1 %1208 }
 0x313   : > { %v2771_v30 = vpop.permute.xlu0 %1223 }
 0x314   : > { %v2769_v27 = vpop.permute.xlu1 %1218 }
 0x317   : > { %v2775_v32 = vpop.permute.xlu0 %1233 }
 0x318   : > { %v2773_v31 = vpop.permute.xlu1 %1228 }
 0x31b   : > { %v2779_v36 = vpop.permute.xlu0 %1243 }
 0x31c   : > { %v2777_v33 = vpop.permute.xlu1 %1238 }
 0x31f   : > { %v1254_v57 = vpop.permute.xlu0 %1253 }
 0x320   : > { %v1249_v45 = vpop.permute.xlu1 %1248 }
 0x394   : > { %v1101_v37 = vpop.f32.mrb[4].mxu0  ;;  %v1161_v38 = vpop.f32.mrb[24].mxu1 }
 0x395   : > { %v1102_v39 = vadd.f32 %v1101_v37, %v910_v4  ;;  %v1162_v42 = vadd.f32 %v1161_v38, %v960_v13  ;;  %v1103_v43 = vpop.f32.mrb[5].mxu0  ;;  %v1163_v44 = vpop.f32.mrb[25].mxu1 }
 0x396   : > { %v1104_v35 = vadd.f32 %v1103_v43, %v910_v4  ;;  %v1164_v40 = vadd.f32 %v1163_v44, %v960_v13  ;;  %v1259_v13 = vpop.permute.xlu1 %1258 }
 0x397   : > { %v1276_v41 = vadd.f32 %v1199_v21, %v1102_v39  ;;  %v1296_v46 = vadd.f32 %v1249_v45, %v1162_v42 }
 0x398   : > { %v1277_v47 = vadd.f32 %v1199_v21, %v1104_v35  ;;  %v1297_v48 = vadd.f32 %v1249_v45, %v1164_v40  ;;  %v1107_v49 = vpop.f32.mrb[6].mxu0  ;;  %v1167_v50 = vpop.f32.mrb[26].mxu1 }
 0x399   : > { %v1679_v51 = vmul.f32 -1.442695, %v1276_v41  ;;  %v1699_v52 = vmul.f32 -1.442695, %v1296_v46  ;;  %v1108_v53 = vadd.f32 %v1107_v49, %v915_v2  ;;  %v1168_v54 = vadd.f32 %v1167_v50, %v965_v14  ;;  %v1109_v55 = vpop.f32.mrb[7].mxu0  ;;  %v1169_v56 = vpop.f32.mrb[27].mxu1 }
 0x39a   : > { %v1680_v58 = vmul.f32 -1.442695, %v1277_v47  ;;  %v1700_v59 = vmul.f32 -1.442695, %v1297_v48  ;;  %v1110_v60 = vadd.f32 %v1109_v55, %v915_v2  ;;  %v1170_v62 = vadd.f32 %v1169_v56, %v965_v14 }
 0x39b   : > { %1957 = vpow2.f32 %v1679_v51  ;;  %v1278_v63 = vadd.f32 %v1204_v24, %v1108_v53  ;;  %v1298_v3 = vadd.f32 %v1254_v57, %v1168_v54  ;;  %v1264_v54 = vpop.permute.xlu0 %1263 }
 0x39c   : > { %1959 = vpow2.f32 %v1699_v52  ;;  %v1279_v7 = vadd.f32 %v1204_v24, %v1110_v60  ;;  %v1299_v10 = vadd.f32 %v1254_v57, %v1170_v62  ;;  %v1113_v11 = vpop.f32.mrb[8].mxu0  ;;  %v1173_v16 = vpop.f32.mrb[28].mxu1 }
 0x39d   : > { %1961 = vpow2.f32 %v1680_v58  ;;  %v1681_v17 = vmul.f32 -1.442695, %v1278_v63  ;;  %v1701_v22 = vmul.f32 -1.442695, %v1298_v3  ;;  %v1114_v23 = vadd.f32 %v1113_v11, %v2743_v8  ;;  %v1115_v28 = vpop.f32.mrb[9].mxu0  ;;  %v1175_v29 = vpop.f32.mrb[29].mxu1 }
 0x39e   : > { %1963 = vpow2.f32 %v1700_v59  ;;  %v1682_v34 = vmul.f32 -1.442695, %v1279_v7  ;;  %v1702_v4 = vmul.f32 -1.442695, %v1299_v10  ;;  %v1174_v2 = vadd.f32 %v1173_v16, %v970_v15 }
 0x39f   : > { %1965 = vpow2.f32 %v1681_v17  ;;  %v1280_v14 = vadd.f32 %v2765_v25, %v1114_v23  ;;  %v1116_v21 = vadd.f32 %v1115_v28, %v2743_v8  ;;  %v1176_v24 = vadd.f32 %v1175_v29, %v970_v15 }
 0x3a0   : > { %1967 = vpow2.f32 %v1701_v22  ;;  %v1300_v37 = vadd.f32 %v1259_v13, %v1174_v2  ;;  %v1119_v38 = vpop.f32.mrb[10].mxu0  ;;  %v1179_v39 = vpop.f32.mrb[30].mxu1 }
 0x3a1   : > { %1969 = vpow2.f32 %v1682_v34  ;;  %v1683_v42 = vmul.f32 -1.442695, %v1280_v14  ;;  %v1281_v43 = vadd.f32 %v2765_v25, %v1116_v21  ;;  %v1301_v44 = vadd.f32 %v1259_v13, %v1176_v24  ;;  %v1121_v45 = vpop.f32.mrb[11].mxu0  ;;  %v1181_v35 = vpop.f32.mrb[31].mxu1 }
 0x3a2   : > { %1971 = vpow2.f32 %v1702_v4  ;;  %v1703_v40 = vmul.f32 -1.442695, %v1300_v37  ;;  %v1120_v8 = vadd.f32 %v1119_v38, %v2745_v1  ;;  %v1180_v49 = vadd.f32 %v1179_v39, %v2759_v18 }
 0x3a3   : > { %1973 = vpow2.f32 %v1683_v42  ;;  %v1684_v41 = vmul.f32 -1.442695, %v1281_v43  ;;  %v1704_v46 = vmul.f32 -1.442695, %v1301_v44  ;;  %v1122_v56 = vadd.f32 %v1121_v45, %v2745_v1  ;;  %v1269_v45 = vpop.permute.xlu1 %1268 }
 0x3a4   : > { %1975 = vpow2.f32 %v1703_v40  ;;  %v1125_v15 = vpop.f32.mrb[12].mxu0  ;;  %v1185_v47 = vpop.f32.mrb[32].mxu1  ;;  %v1282_v59 = vadd.f32 %v2767_v26, %v1120_v8  ;;  %v1302_v7 = vadd.f32 %v1264_v54, %v1180_v49  ;;  %v1182_v10 = vadd.f32 %v1181_v35, %v2759_v18 }
 0x3a5   : > { %v1958_v48 = vpop.eup %1957  ;;  %1977 = vpow2.f32 %v1684_v41  ;;  %v1127_v50 = vpop.f32.mrb[13].mxu0  ;;  %v1126_v1 = vadd.f32 %v1125_v15, %v2747_v0  ;;  %v1283_v29 = vadd.f32 %v2767_v26, %v1122_v56  ;;  %v1186_v18 = vadd.f32 %v1185_v47, %v2761_v19 }
 0x3a6   : > { %v1187_v51 = vpop.f32.mrb[33].mxu1  ;;  %v1960_v25 = vpop.eup %1959  ;;  %v1404_v52 = vadd.f32 1.0, %v1958_v48  ;;  %1979 = vpow2.f32 %v1704_v46  ;;  %v1685_v2 = vmul.f32 -1.442695, %v1282_v59  ;;  %v1705_v24 = vmul.f32 -1.442695, %v1302_v7 }
 0x3a7   : > { %v1962_v53 = vpop.eup %1961  ;;  %v1424_v55 = vadd.f32 1.0, %v1960_v25  ;;  %v1303_v37 = vadd.f32 %v1264_v54, %v1182_v10  ;;  %v1284_v26 = vadd.f32 %v2769_v27, %v1126_v1  ;;  %v1128_v43 = vadd.f32 %v1127_v50, %v2747_v0 }
 0x3a8   : > { %v1964_v57 = vpop.eup %1963  ;;  %1981 = vrcp.f32 %v1404_v52  ;;  %v1405_v58 = vadd.f32 1.0, %v1962_v53  ;;  %v1131_v60 = vpop.f32.mrb[14].mxu0  ;;  %v1686_v40 = vmul.f32 -1.442695, %v1283_v29  ;;  %v1188_v41 = vadd.f32 %v1187_v51, %v2761_v19 }
 0x3a9   : > { %v1191_v62 = vpop.f32.mrb[34].mxu1  ;;  %v1966_v63 = vpop.eup %1965  ;;  %1983 = vrcp.f32 %v1424_v55  ;;  %v1425_v3 = vadd.f32 1.0, %v1964_v57  ;;  %v1304_v15 = vadd.f32 %v1269_v45, %v1186_v18  ;;  %v1132_v47 = vadd.f32 %v1131_v60, %v2749_v5  ;;  %v2085_v55 = vld [vmem:[%s2289_s25] sm:$0xff] }
 0x3aa   : > { %v1133_v11 = vpop.f32.mrb[15].mxu0  ;;  %v1968_v16 = vpop.eup %1967  ;;  %1985 = vrcp.f32 %v1405_v58  ;;  %v1406_v17 = vadd.f32 1.0, %v1966_v63  ;;  %v1706_v49 = vmul.f32 -1.442695, %v1303_v37  ;;  %v1192_v50 = vadd.f32 %v1191_v62, %v2763_v20  ;;  %v2086_v62 = vld [vmem:[%s2289_s25 + $0xa0] sm:$0xff] }
 0x3ab   : > { %v1193_v22 = vpop.f32.mrb[35].mxu1  ;;  %v1970_v23 = vpop.eup %1969  ;;  %1987 = vrcp.f32 %v1425_v3  ;;  %v1426_v28 = vadd.f32 1.0, %v1968_v16  ;;  %v1687_v19 = vmul.f32 -1.442695, %v1284_v26  ;;  %v1285_v51 = vadd.f32 %v2769_v27, %v1128_v43  ;;  %v2091_v26 = vld [vmem:[%s2289_s25 + $0x18] sm:$0xff] }
 0x3ac   : > { %v1972_v34 = vpop.eup %1971  ;;  %1989 = vrcp.f32 %v1406_v17  ;;  %v1407_v4 = vadd.f32 1.0, %v1970_v23  ;;  %v1137_v13 = vpop.f32.mrb[16].mxu0  ;;  %v1134_v53 = vadd.f32 %v1133_v11, %v2749_v5  ;;  %v1305_v57 = vadd.f32 %v1269_v45, %v1188_v41 }
 0x3ad   : > { %v1974_v14 = vpop.eup %1973  ;;  %1991 = vrcp.f32 %v1426_v28  ;;  %v1427_v21 = vadd.f32 1.0, %v1972_v34  ;;  %v2794_v38 = vpop.f32.mrb[17].mxu0  ;;  %v1194_v58 = vadd.f32 %v1193_v22, %v2763_v20  ;;  %v1286_v3 = vadd.f32 %v2771_v30, %v1132_v47  ;;  %v2087_v20 = vld [vmem:[%s2289_s25 + $0x8] sm:$0xff] }
 0x3ae   : > { %v1976_v39 = vpop.eup %1975  ;;  %1993 = vrcp.f32 %v1407_v4  ;;  %v1408_v42 = vadd.f32 1.0, %v1974_v14  ;;  %v1274_v60 = vpop.permute.xlu0 %1273  ;;  %v1138_v27 = vadd.f32 %v1137_v13, %v2751_v6  ;;  %v1707_v11 = vmul.f32 -1.442695, %v1304_v15  ;;  %v2088_v22 = vld [vmem:[%s2289_s25 + $0xa8] sm:$0xff]  ;;  %v2089_v4 = vld [vmem:[%s2289_s25 + $0x10] sm:$0xff]  ;;  %v2093_v15 = vld [vmem:[%s2289_s25 + $0x20] sm:$0xff] }
 0x3af   : > { %v1978_v44 = vpop.eup %1977  ;;  %1995 = vrcp.f32 %v1427_v21  ;;  %v1428_v35 = vadd.f32 1.0, %v1976_v39  ;;  %v1306_v16 = vadd.f32 %v1274_v60, %v1192_v50  ;;  %v1688_v28 = vmul.f32 -1.442695, %v1285_v51  ;;  %v2090_v21 = vld [vmem:[%s2289_s25 + $0xb0] sm:$0xff]  ;;  %v2094_v50 = vld [vmem:[%s2289_s25 + $0xc0] sm:$0xff] }
 0x3b0   : > { %v1980_v46 = vpop.eup %1979  ;;  %1997 = vrcp.f32 %v1408_v42  ;;  %v1409_v8 = vadd.f32 1.0, %v1978_v44  ;;  %v2804_v48 = vpop.f32.mrb[18].mxu0  ;;  %v1287_v29 = vadd.f32 %v2771_v30, %v1134_v53  ;;  %v1708_v18 = vmul.f32 -1.442695, %v1305_v57  ;;  %v2095_v53 = vld [vmem:[%s2289_s25 + $0x28] sm:$0xff] }
 0x3b1   : > { %1999 = vrcp.f32 %v1428_v35  ;;  %v1429_v0 = vadd.f32 1.0, %v1980_v46  ;;  %v2807_v25 = vpop.f32.mrb[19].mxu0  ;;  %v1307_v13 = vadd.f32 %v1274_v60, %v1194_v58  ;;  %v1689_v37 = vmul.f32 -1.442695, %v1286_v3 }
 0x3b2   : > { %v1982_v52 = vpop.eup %1981  ;;  %2001 = vrcp.f32 %v1409_v8  ;;  %v1288_v39 = vadd.f32 %v2773_v31, %v1138_v27  ;;  %v1709_v44 = vmul.f32 -1.442695, %v1306_v16  ;;  %v1690_v46 = vmul.f32 -1.442695, %v1287_v29 }
 0x3b3   : > { %v1984_v54 = vpop.eup %1983  ;;  %v1500_v56 = vmul.f32 %v2085_v55, %v1982_v52  ;;  %2003 = vrcp.f32 %v1429_v0  ;;  %v1710_v0 = vmul.f32 -1.442695, %v1307_v13  ;;  %v1144_v16 = vadd.f32 %v2804_v48, %v2753_v9 }
 0x3b4   : > { %v1986_v59 = vpop.eup %1985  ;;  %v1520_v63 = vmul.f32 %v2086_v62, %v1984_v54  ;;  %2005 = vpow2.f32 %v1685_v2  ;;  %v2816_v5 = vpop.f32.mrb[20].mxu0 }
 0x3b5   : > { %v1988_v7 = vpop.eup %1987  ;;  %1532 = vst [vmem:[%s2819_s22] sm:$0xff] %v1500_v56  ;;  %v1501_v10 = vmul.f32 %v2087_v20, %v1986_v59  ;;  %2007 = vpow2.f32 %v1705_v24  ;;  %v2823_v17 = vpop.f32.mrb[21].mxu0  ;;  %v2096_v56 = vld [vmem:[%s2289_s25 + $0xc8] sm:$0xff]  ;;  %v1140_v20 = vadd.f32 %v2794_v38, %v2751_v6  ;;  %v1290_v13 = vadd.f32 %v2775_v32, %v1144_v16  ;;  %v2106_v16 = vld [vmem:[%s2289_s25 + $0xf0] sm:$0xff] }
 0x3b6   : > { %v1990_v1 = vpop.eup %1989  ;;  %1552 = vst [vmem:[%s2819_s22 + $0xa0] sm:$0xff] %v1520_v63  ;;  %v1521_v23 = vmul.f32 %v2088_v22, %v1988_v7  ;;  %2009 = vpow2.f32 %v1686_v40  ;;  %v2092_v40 = vld [vmem:[%s2289_s25 + $0xb8] sm:$0xff]  ;;  %v1152_v48 = vadd.f32 %v2823_v17, %v2755_v61 }
 0x3b7   : > { %v1992_v34 = vpop.eup %1991  ;;  %1533 = vst [vmem:[%s2819_s22 + $0x8] sm:$0xff] %v1501_v10  ;;  %v1502_v2 = vmul.f32 %v2089_v4, %v1990_v1  ;;  %2011 = vpow2.f32 %v1706_v49  ;;  %v1289_v38 = vadd.f32 %v2773_v31, %v1140_v20  ;;  %v2105_v20 = vld [vmem:[%s2289_s25 + $0x50] sm:$0xff] }
 0x3b8   : > { %v1994_v14 = vpop.eup %1993  ;;  %1553 = vst [vmem:[%s2819_s22 + $0xa8] sm:$0xff] %v1521_v23  ;;  %v1522_v24 = vmul.f32 %v2090_v21, %v1992_v34  ;;  %2013 = vpow2.f32 %v1687_v19  ;;  %v2833_v30 = vpop.f32.mrb[22].mxu0  ;;  %v1691_v19 = vmul.f32 -1.442695, %v1288_v39  ;;  %v1146_v23 = vadd.f32 %v2807_v25, %v2753_v9 }
 0x3b9   : > { %v1996_v42 = vpop.eup %1995  ;;  %1534 = vst [vmem:[%s2819_s22 + $0x10] sm:$0xff] %v1502_v2  ;;  %v1503_v43 = vmul.f32 %v2091_v26, %v1994_v14  ;;  %2015 = vpow2.f32 %v1707_v11  ;;  %v2837_v45 = vpop.f32.mrb[23].mxu0  ;;  %v1150_v34 = vadd.f32 %v2816_v5, %v2755_v61  ;;  %v1156_v9 = vadd.f32 %v2833_v30, %v2757_v12 }
 0x3ba   : > { %v1998_v35 = vpop.eup %1997  ;;  %1554 = vst [vmem:[%s2819_s22 + $0xb0] sm:$0xff] %v1522_v24  ;;  %v1523_v41 = vmul.f32 %v2092_v40, %v1996_v42  ;;  %2017 = vpow2.f32 %v1688_v28  ;;  %v1291_v5 = vadd.f32 %v2775_v32, %v1146_v23  ;;  %v1158_v21 = vadd.f32 %v2837_v45, %v2757_v12  ;;  %v2107_v23 = vld [vmem:[%s2289_s25 + $0x58] sm:$0xff] }
 0x3bb   : > { %v2000_v8 = vpop.eup %1999  ;;  %1535 = vst [vmem:[%s2819_s22 + $0x18] sm:$0xff] %v1503_v43  ;;  %v1504_v47 = vmul.f32 %v2093_v15, %v1998_v35  ;;  %2019 = vpow2.f32 %v1708_v18  ;;  %v1292_v17 = vadd.f32 %v2777_v33, %v1150_v34  ;;  %v1692_v39 = vmul.f32 -1.442695, %v1289_v38  ;;  %v2108_v34 = vld [vmem:[%s2289_s25 + $0xf8] sm:$0xff]  ;;  %v2109_v38 = vld [vmem:[%s2289_s25 + $0x60] sm:$0xff] }
 0x3bc   : > { %v2002_v49 = vpop.eup %2001  ;;  %1555 = vst [vmem:[%s2819_s22 + $0xb8] sm:$0xff] %v1523_v41  ;;  %v1524_v52 = vmul.f32 %v2094_v50, %v2000_v8  ;;  %2021 = vpow2.f32 %v1689_v37  ;;  %v1293_v30 = vadd.f32 %v2777_v33, %v1152_v48  ;;  %v1693_v26 = vmul.f32 -1.442695, %v1290_v13 }
 0x3bd   : > { %v2004_v51 = vpop.eup %2003  ;;  %1536 = vst [vmem:[%s2819_s22 + $0x20] sm:$0xff] %v1504_v47  ;;  %v1505_v54 = vmul.f32 %v2095_v53, %v2002_v49  ;;  %2023 = vpow2.f32 %v1709_v44  ;;  %v1294_v12 = vadd.f32 %v2779_v36, %v1156_v9  ;;  %v2097_v44 = vld [vmem:[%s2289_s25 + $0x30] sm:$0xff]  ;;  %v1694_v35 = vmul.f32 -1.442695, %v1291_v5  ;;  %v2099_v47 = vld [vmem:[%s2289_s25 + $0x38] sm:$0xff]  ;;  %v2101_v53 = vld [vmem:[%s2289_s25 + $0x40] sm:$0xff] }
 0x3be   : > { %v2006_v55 = vpop.eup %2005  ;;  %1556 = vst [vmem:[%s2819_s22 + $0xc0] sm:$0xff] %v1524_v52  ;;  %v1525_v57 = vmul.f32 %v2096_v56, %v2004_v51  ;;  %2025 = vpow2.f32 %v1690_v46  ;;  %v1295_v40 = vadd.f32 %v2779_v36, %v1158_v21  ;;  %v2098_v46 = vld [vmem:[%s2289_s25 + $0xd0] sm:$0xff]  ;;  %v1695_v8 = vmul.f32 -1.442695, %v1292_v17  ;;  %v2100_v52 = vld [vmem:[%s2289_s25 + $0xd8] sm:$0xff] }
 0x3bf   : > { %v2008_v58 = vpop.eup %2007  ;;  %1537 = vst [vmem:[%s2819_s22 + $0x28] sm:$0xff] %v1505_v54  ;;  %v1410_v59 = vadd.f32 1.0, %v2006_v55  ;;  %2027 = vpow2.f32 %v1710_v0  ;;  %v1696_v49 = vmul.f32 -1.442695, %v1293_v30 }
 0x3c0   : > { %v2010_v60 = vpop.eup %2009  ;;  %1557 = vst [vmem:[%s2819_s22 + $0xc8] sm:$0xff] %v1525_v57  ;;  %v1430_v62 = vadd.f32 1.0, %v2008_v58  ;;  %2029 = vpow2.f32 %v1691_v19  ;;  %v1697_v19 = vmul.f32 -1.442695, %v1294_v12  ;;  %v1698_v55 = vmul.f32 -1.442695, %v1295_v40 }
 0x3c1   : > { %v2012_v63 = vpop.eup %2011  ;;  %2031 = vrcp.f32 %v1410_v59  ;;  %v1411_v3 = vadd.f32 1.0, %v2010_v60  ;;  %v2102_v57 = vld [vmem:[%s2289_s25 + $0xe0] sm:$0xff]  ;;  %v2103_v60 = vld [vmem:[%s2289_s25 + $0x48] sm:$0xff]  ;;  %v2111_v12 = vld [vmem:[%s2289_s25 + $0x70] sm:$0xff] }
 0x3c2   : > { %v2014_v27 = vpop.eup %2013  ;;  %2033 = vrcp.f32 %v1430_v62  ;;  %v1431_v7 = vadd.f32 1.0, %v2012_v63 }
 0x3c3   : > { %v2016_v10 = vpop.eup %2015  ;;  %2035 = vrcp.f32 %v1411_v3  ;;  %v1412_v11 = vadd.f32 1.0, %v2014_v27  ;;  %v2104_v3 = vld [vmem:[%s2289_s25 + $0xe8] sm:$0xff] }
 0x3c4   : > { %v2018_v1 = vpop.eup %2017  ;;  %2037 = vrcp.f32 %v1431_v7  ;;  %v1432_v22 = vadd.f32 1.0, %v2016_v10 }
 0x3c5   : > { %v2020_v28 = vpop.eup %2019  ;;  %2039 = vrcp.f32 %v1412_v11  ;;  %v1413_v29 = vadd.f32 1.0, %v2018_v1 }
 0x3c6   : > { %v2022_v4 = vpop.eup %2021  ;;  %2041 = vrcp.f32 %v1432_v22  ;;  %v1433_v6 = vadd.f32 1.0, %v2020_v28 }
 0x3c7   : > { %v2024_v2 = vpop.eup %2023  ;;  %2043 = vrcp.f32 %v1413_v29  ;;  %v1414_v18 = vadd.f32 1.0, %v2022_v4 }
 0x3c8   : > { %v2026_v25 = vpop.eup %2025  ;;  %2045 = vrcp.f32 %v1433_v6  ;;  %v1434_v14 = vadd.f32 1.0, %v2024_v2 }
 0x3c9   : > { %v2028_v31 = vpop.eup %2027  ;;  %2047 = vrcp.f32 %v1414_v18  ;;  %v1415_v61 = vadd.f32 1.0, %v2026_v25 }
 0x3ca   : > { %v2030_v24 = vpop.eup %2029  ;;  %2049 = vrcp.f32 %v1434_v14  ;;  %v1435_v37 = vadd.f32 1.0, %v2028_v31 }
 0x3cb   : > { %v2032_v42 = vpop.eup %2031  ;;  %2051 = vrcp.f32 %v1415_v61  ;;  %v1416_v32 = vadd.f32 1.0, %v2030_v24 }
 0x3cc   : > { %v2034_v43 = vpop.eup %2033  ;;  %v1506_v45 = vmul.f32 %v2097_v44, %v2032_v42  ;;  %2053 = vrcp.f32 %v1435_v37  ;;  %v2110_v42 = vld [vmem:[%s2289_s25 + $0x68] sm:$0xff] }
 0x3cd   : > { %v2036_v41 = vpop.eup %2035  ;;  %v1526_v33 = vmul.f32 %v2098_v46, %v2034_v43  ;;  %2055 = vrcp.f32 %v1416_v32 }
 0x3ce   : > { %v2038_v15 = vpop.eup %2037  ;;  %1538 = vst [vmem:[%s2819_s22 + $0x30] sm:$0xff] %v1506_v45  ;;  %v1507_v0 = vmul.f32 %v2099_v47, %v2036_v41  ;;  %2057 = vpow2.f32 %v1692_v39  ;;  %v2112_v45 = vld [vmem:[%s2289_s25 + $0x78] sm:$0xff]  ;;  %v2113_v41 = vld [vmem:[%s2289_s25 + $0x80] sm:$0xff] }
 0x3cf   : > { %v2040_v50 = vpop.eup %2039  ;;  %1558 = vst [vmem:[%s2819_s22 + $0xd0] sm:$0xff] %v1526_v33  ;;  %v1527_v36 = vmul.f32 %v2100_v52, %v2038_v15  ;;  %2059 = vpow2.f32 %v1693_v26 }
 0x3d0   : > { %v2042_v51 = vpop.eup %2041  ;;  %1539 = vst [vmem:[%s2819_s22 + $0x38] sm:$0xff] %v1507_v0  ;;  %v1508_v54 = vmul.f32 %v2101_v53, %v2040_v50  ;;  %2061 = vpow2.f32 %v1694_v35  ;;  %v2115_v0 = vld [vmem:[%s2289_s25 + $0x90] sm:$0xff]  ;;  %v2116_v50 = vld [vmem:[%s2289_s25 + $0x98] sm:$0xff] }
 0x3d1   : > { %v2044_v56 = vpop.eup %2043  ;;  %1559 = vst [vmem:[%s2819_s22 + $0xd8] sm:$0xff] %v1527_v36  ;;  %v1528_v58 = vmul.f32 %v2102_v57, %v2042_v51  ;;  %2063 = vpow2.f32 %v1695_v8  ;;  %v2114_v8 = vld [vmem:[%s2289_s25 + $0x88] sm:$0xff] }
 0x3d2   : > { %v2046_v59 = vpop.eup %2045  ;;  %1540 = vst [vmem:[%s2819_s22 + $0x40] sm:$0xff] %v1508_v54  ;;  %v1509_v62 = vmul.f32 %v2103_v60, %v2044_v56  ;;  %2065 = vpow2.f32 %v1696_v49 }
 0x3d3   : > { %v2048_v63 = vpop.eup %2047  ;;  %1560 = vst [vmem:[%s2819_s22 + $0xe0] sm:$0xff] %v1528_v58  ;;  %v1529_v27 = vmul.f32 %v2104_v3, %v2046_v59  ;;  %2067 = vpow2.f32 %v1697_v19 }
 0x3d4   : > { %v2050_v7 = vpop.eup %2049  ;;  %1541 = vst [vmem:[%s2819_s22 + $0x48] sm:$0xff] %v1509_v62  ;;  %v1510_v10 = vmul.f32 %v2105_v20, %v2048_v63  ;;  %2069 = vpow2.f32 %v1698_v55 }
 0x3d5   : > { %v2052_v11 = vpop.eup %2051  ;;  %1561 = vst [vmem:[%s2819_s22 + $0xe8] sm:$0xff] %v1529_v27  ;;  %v1530_v1 = vmul.f32 %v2106_v16, %v2050_v7 }
 0x3d6   : > { %v2054_v22 = vpop.eup %2053  ;;  %1542 = vst [vmem:[%s2819_s22 + $0x50] sm:$0xff] %v1510_v10  ;;  %v1511_v28 = vmul.f32 %v2107_v23, %v2052_v11 }
 0x3d7   : > { %v2056_v29 = vpop.eup %2055  ;;  %1562 = vst [vmem:[%s2819_s22 + $0xf0] sm:$0xff] %v1530_v1  ;;  %v1531_v4 = vmul.f32 %v2108_v34, %v2054_v22 }
 0x3d8   : > { %v2058_v6 = vpop.eup %2057  ;;  %1543 = vst [vmem:[%s2819_s22 + $0x58] sm:$0xff] %v1511_v28  ;;  %v1512_v48 = vmul.f32 %v2109_v38, %v2056_v29 }
 0x3d9   : > { %v2060_v2 = vpop.eup %2059  ;;  %1563 = vst [vmem:[%s2819_s22 + $0xf8] sm:$0xff] %v1531_v4  ;;  %v1417_v18 = vadd.f32 1.0, %v2058_v6 }
 0x3da   : > { %v2062_v13 = vpop.eup %2061  ;;  %1544 = vst [vmem:[%s2819_s22 + $0x60] sm:$0xff] %v1512_v48  ;;  %v1418_v9 = vadd.f32 1.0, %v2060_v2 }
 0x3db   : > { %v2064_v25 = vpop.eup %2063  ;;  %2071 = vrcp.f32 %v1417_v18  ;;  %v1419_v14 = vadd.f32 1.0, %v2062_v13 }
 0x3dc   : > { %v2066_v5 = vpop.eup %2065  ;;  %2073 = vrcp.f32 %v1418_v9  ;;  %v1420_v21 = vadd.f32 1.0, %v2064_v25 }
 0x3dd   : > { %v2068_v31 = vpop.eup %2067  ;;  %2075 = vrcp.f32 %v1419_v14  ;;  %v1421_v61 = vadd.f32 1.0, %v2066_v5 }
 0x3de   : > { %v2070_v17 = vpop.eup %2069  ;;  %2077 = vrcp.f32 %v1420_v21  ;;  %v1422_v24 = vadd.f32 1.0, %v2068_v31 }
 0x3df   : > { %2079 = vrcp.f32 %v1421_v61  ;;  %v1423_v37 = vadd.f32 1.0, %v2070_v17 }
 0x3e0   : > { %2081 = vrcp.f32 %v1422_v24 }
 0x3e1   : > { %2083 = vrcp.f32 %v1423_v37 }
 0x3e5   : > { %v2072_v39 = vpop.eup %2071 }
 0x3e6   : > { %v2074_v30 = vpop.eup %2073  ;;  %v1513_v32 = vmul.f32 %v2110_v42, %v2072_v39 }
 0x3e7   : > { %v2076_v26 = vpop.eup %2075  ;;  %v1514_v43 = vmul.f32 %v2111_v12, %v2074_v30 }
 0x3e8   : > { %v2078_v44 = vpop.eup %2077  ;;  %1545 = vst [vmem:[%s2819_s22 + $0x68] sm:$0xff] %v1513_v32  ;;  %v1515_v35 = vmul.f32 %v2112_v45, %v2076_v26 }
 0x3e9   : > { %v2080_v40 = vpop.eup %2079  ;;  %1546 = vst [vmem:[%s2819_s22 + $0x70] sm:$0xff] %v1514_v43  ;;  %v1516_v46 = vmul.f32 %v2113_v41, %v2078_v44 }
 0x3ea   : > { %v2082_v33 = vpop.eup %2081  ;;  %1547 = vst [vmem:[%s2819_s22 + $0x78] sm:$0xff] %v1515_v35  ;;  %v1517_v15 = vmul.f32 %v2114_v8, %v2080_v40 }
 0x3eb   : > { %v2084_v47 = vpop.eup %2083  ;;  %1548 = vst [vmem:[%s2819_s22 + $0x80] sm:$0xff] %v1516_v46  ;;  %v1518_v49 = vmul.f32 %v2115_v0, %v2082_v33 }
 0x3ec   : > { %1549 = vst [vmem:[%s2819_s22 + $0x88] sm:$0xff] %v1517_v15  ;;  %v1519_v52 = vmul.f32 %v2116_v50, %v2084_v47 }
 0x3ed   : > { %1550 = vst [vmem:[%s2819_s22 + $0x90] sm:$0xff] %v1518_v49 }
 0x3ee   : > { %1551 = vst [vmem:[%s2819_s22 + $0x98] sm:$0xff] %v1519_v52 }
 0x3ef   : > { %2130 = shalt.err (!%p2127_p3)
}
 0x3f0   : > { %s2131_s25 = scalar_lea.hbm %s2913_s27, 4096  ;;  %s2135_s23 = scalar_lea.hbm %s2973_s9, 8192 }
 0x3f1   : > { %p2132_p4 = scmp.ne.s32.totalorder %s2913_s27, %s2131_s25  ;;  %p2136_p9 = scmp.lt.u32.totalorder %s2913_s27, %s2973_s9 }
 0x3f2   : > { %p2137_p10 = scmp.lt.u32.totalorder %s2135_s23, %s2131_s25  ;;  %p2139_p12 = scmp.lt.u32.totalorder %s2131_s25, %s2913_s27 }
 0x3f3   : > { %p2133_p7 = pnand %p2132_p4, %p2274_p5 }
 0x3f4   : > { %p2138_p11 = por %p2137_p10, %p2136_p9 }
 0x3f5   : > { %p2134_p8 = pneg %p2133_p7 }
 0x3f6   : > { %p2140_p13 = por %p2139_p12, %p2138_p11 }
 0x3f8   : > { %p2141_p0 = pnand %p2140_p13, %p2134_p8 }
 0x3fa   : > { %2144 = shalt.err (!%p2141_p0)
}
 0x3fb   : > { %s2184_s29 = smov 256   ;;  %s2185_s14 = smov 16  }
 0x3fc   : > { %1912 = dma.vmem_to_hbm [thread:$0]  (%p2274_p5), %s2915_s24, 4096, %s2913_s27, %s2923_s28, %s2184_s29, %s2184_s29, %s2185_s14  }
 0x3fd PF: > { %p1918_p1 = scmp.ge.s32.totalorder %s2179_s12, 2  ;;  %s1593_s16 = sand.u32 1, %s2167_s30  }
 0x3fe   : > { %s1594_s21 = scalar_lea.sflag [#allocation3], %s1593_s16 }
 0x3ff   : > { %p1915_p2 = pnand %p1918_p1, %p2278_p6 }
 0x401   : > { %2162 = dma.done.wait (!%p1915_p2), %s1594_s21, 4096  }
 0x402   : > { %2164 = vsyncadd (!%p1915_p2), %s1594_s21, 4294963200  ;;  %p19_p3 = scmp.ge.s32.totalorder %s2261_s15, 4   ;;  %s2976_s30 = smov %s2171_s10 }
 0x403   : > { %s2977_s10 = smov %s2175_s11  ;;  %s2978_s11 = smov %s2272_s18 }
 0x404   : > { %s2979_s12 = smov %s2261_s15  ;;  %21 = sbr.rel (!%p19_p3) target bundleno = 3 (0x3), region = 91 }
 0x40b   :  { %1599 = vsyncpa [#allocation3], 1 }
 0x40c   :  { %1601 = vsyncpa [#allocation3 + $0x1], 1 }

</bundles_post_ra>
